<compile_context>
chip_gen: v6e
topology: v6e:2x2x1
jax: 0.10.0
libtpu: 0.0.40
codegen_flags: <defaults>
</compile_context>

<pallas_src>
import numpy as np
import jax
import jax.numpy as jnp
from jax.experimental import pallas as pl
from jax.experimental.pallas import tpu as pltpu

# ---------------- configuration (stackedSCI ctor arguments) ----------------
IN_CHANNELS = 4      # in_channels
EXPAND      = 2      # expand -> hidden channels = in_channels * expand
KERNEL      = 3      # kernel
STRIDE      = 1      # stride (interactors are length preserving)
PADDING     = (KERNEL - 1) // 2
SPLIT       = True   # split
SEQ_SIZE    = 16     # seq_size
BATCH       = 2      # batch_size
K_STACKS    = 2      # K : number of stacked SCI_Nets
L_LEVELS    = 2      # L : depth of the binary SCI tree
HORIZON     = 4      # horizon
HIDDEN      = IN_CHANNELS * EXPAND

C, T, H, HZ = IN_CHANNELS, SEQ_SIZE, HIDDEN, HORIZON
CT = C * T                          # 64  : activation lane width in the kernel
HT = H * T                          # 128 : packed conv1 (hidden) lane width
NCONV = K_STACKS * L_LEVELS * 2     # stacks x levels x {phi/psi, rho/eta}

_VMEM = pl.BlockSpec(memory_space=pltpu.MemorySpace.VMEM)


# --------------------------- tree-order bookkeeping -------------------------
def _tree_perm(n, depth):
    if depth == 0:
        return list(range(n))
    sub = _tree_perm(n // 2, depth - 1)
    return [2 * q for q in sub] + [2 * q + 1 for q in sub]


_PI     = np.array(_tree_perm(T, L_LEVELS))   # tree position -> original time
_INV_PI = np.argsort(_PI)                     # original time  -> tree position


def _node_times(path):
    """Original time indices of a tree node, in the node's local order."""
    ts = list(range(T))
    for b in path:
        ts = ts[b::2]
    return np.array(ts)


def _lane_map(times):
    """x_tree lanes (channel-major, lane = c*T + tree_pos) for a node."""
    pos = _INV_PI[times]
    return (np.arange(C)[:, None] * T + pos[None, :]).reshape(-1)


# =============================== Pallas kernel ==============================
def _stacked_sci_kernel(x_ref, w1_ref, b1_ref, w2_ref, b2_ref,
                        wp_ref, bp_ref, sx_ref, sp_ref, o_ref):
    """Entire stackedSCI forward.

    x_ref  : [B, C*T]            f32  input, time pre-permuted to tree order
    w1_ref : [NCONV, C*T, H*T]   bf16 packed block-diag Toeplitz conv1 weights
    b1_ref : [NCONV, 1, H*T]     f32
    w2_ref : [NCONV, H*T, C*T]   bf16 packed conv2 (eta sign + routing folded)
    b2_ref : [NCONV, 1, C*T]     f32
    wp_ref : [K, C*T, C*HZ]      bf16 projection, inverse tree perm folded in
    bp_ref : [K, 1, C*HZ]        f32
    sx_ref : [C*T, C*T]          bf16 rolling-window selector (x part)
    sp_ref : [C*HZ, C*T]         bf16 rolling-window selector (pred part)
    o_ref  : [B, K*C*HZ]         f32
    """
    def conv_pair(idx, u):
        # conv1 -> LeakyReLU -> conv2 -> tanh, as two 128-lane MXU matmuls
        y = jnp.dot(u.astype(jnp.bfloat16), w1_ref[idx],
                    preferred_element_type=jnp.float32) + b1_ref[idx]
        y = jnp.where(y > 0, y, 0.01 * y)                   # LeakyReLU(0.01)
        z = jnp.dot(y.astype(jnp.bfloat16), w2_ref[idx],
                    preferred_element_type=jnp.float32) + b2_ref[idx]
        return jnp.tanh(z)

    x = x_ref[...]                                          # f32, tree order
    preds = []
    for k in range(K_STACKS):                               # unrolled: K=2
        h = x
        for lvl in range(L_LEVELS):                         # unrolled: L=2
            idx = (k * L_LEVELS + lvl) * 2
            s = h * jnp.exp(conv_pair(idx, h))      # exp-gated even/odd inter.
            h = s + conv_pair(idx + 1, s)           # rho / -eta (sign folded)
        y = h + x                                   # residual
        pred = jnp.dot(y.astype(jnp.bfloat16), wp_ref[k],
                       preferred_element_type=jnp.float32) + bp_ref[k]
        preds.append(pred)                          # [B, C*HZ]
        if k + 1 < K_STACKS:                        # rolling window, in VMEM
            x = (jnp.dot(x.astype(jnp.bfloat16), sx_ref[...],
                         preferred_element_type=jnp.float32) +
                 jnp.dot(pred.astype(jnp.bfloat16), sp_ref[...],
                         preferred_element_type=jnp.float32))
    o_ref[...] = jnp.concatenate(preds, axis=1)     # one lane-dense store


def stacked_sci_pallas(packed, x):
    """x: [B, C, T] -> [B, K*C, HZ] via one fused pallas_call."""
    B = x.shape[0]
    xt = x[:, :, _PI].reshape(B, CT)                # permute to tree order once
    out = pl.pallas_call(
        _stacked_sci_kernel,
        out_shape=jax.ShapeDtypeStruct((B, K_STACKS * C * HZ), jnp.float32),
        in_specs=[_VMEM] * 9,
        out_specs=_VMEM,
    )(xt, packed["w1"], packed["b1"], packed["w2"], packed["b2"],
      packed["wp"], packed["bp"], packed["sx"], packed["sp"])
    return out.reshape(B, K_STACKS * C, HZ)


# ============================ parameter construction ========================
def conv1d_to_matrix(w, t):
    """Dense [Cout*t, Cin*t] equivalent of a zero-padded 'same' Conv1d."""
    co, ci, k = w.shape
    pad = (k - 1) // 2
    s = jnp.arange(t)[:, None]
    u = jnp.arange(t)[None, :]
    dk = u - s + pad
    valid = (dk >= 0) & (dk < k)
    m = w[:, :, jnp.clip(dk, 0, k - 1)]
    m = jnp.where(valid[None, None], m, 0.0)
    return jnp.transpose(m, (0, 2, 1, 3)).reshape(co * t, ci * t)


def _init_raw(key):
    """Raw per-interactor weights (same structure the reference consumes)."""
    def init_interactor(k):
        k1, k2, k3, k4 = jax.random.split(k, 4)
        w1 = 0.3 * jax.random.normal(k1, (H, C, KERNEL), jnp.float32)
        b1 = 0.1 * jax.random.normal(k2, (H,), jnp.float32)
        w2 = 0.3 * jax.random.normal(k3, (C, H, KERNEL), jnp.float32)
        b2 = 0.1 * jax.random.normal(k4, (C,), jnp.float32)
        return (w1, b1, w2, b2)

    def init_block(k):  # phi, psi, rho, eta
        return [init_interactor(kk) for kk in jax.random.split(k, 4)]

    def init_net(k):
        ks = jax.random.split(k, L_LEVELS + 1)
        blocks = [[init_block(kk) for kk in jax.random.split(ks[lvl], 2 ** lvl)]
                  for lvl in range(L_LEVELS)]
        kp1, kp2 = jax.random.split(ks[-1])
        wp = 0.3 * jax.random.normal(kp1, (T, HZ), jnp.float32)
        bp = 0.1 * jax.random.normal(kp2, (1, HZ), jnp.float32)
        return {"blocks": blocks, "proj": (wp, bp)}

    return [init_net(kk) for kk in jax.random.split(key, K_STACKS)]


def _pack_group(slots, tc):
    """Pack a list of interactors into one block-diag conv pair.

    slots: list of ((w1, b1, w2, b2), in_path, out_path, sign)."""
    W1 = jnp.zeros((CT, HT), jnp.float32)
    B1 = jnp.zeros((1, HT), jnp.float32)
    W2 = jnp.zeros((HT, CT), jnp.float32)
    B2 = jnp.zeros((1, CT), jnp.float32)
    hid = 0
    for (w1, b1, w2, b2), in_path, out_path, sign in slots:
        in_l = _lane_map(_node_times(in_path))       # [C*tc] x_tree lanes
        out_l = _lane_map(_node_times(out_path))     # [C*tc] x_tree lanes
        t1 = conv1d_to_matrix(w1, tc).T              # [C*tc, H*tc]
        t2 = conv1d_to_matrix(w2, tc).T              # [H*tc, C*tc]
        hcols = np.arange(hid, hid + H * tc)
        W1 = W1.at[in_l[:, None], hcols[None, :]].set(t1)
        B1 = B1.at[0, hcols].set(jnp.repeat(b1, tc))
        W2 = W2.at[hcols[:, None], out_l[None, :]].set(sign * t2)
        B2 = B2.at[0, out_l].set(sign * jnp.repeat(b2, tc))
        hid += H * tc
    return W1, B1, W2, B2


def _build_shift():
    """0/1 selectors implementing x_{j+1}=cat(x_j,pred)[:,:,HZ:T+HZ] in tree order."""
    SX = np.zeros((CT, CT), np.float32)
    SP = np.zeros((C * HZ, CT), np.float32)
    for c in range(C):
        for p in range(T):
            src_t = int(_PI[p]) + HZ
            dst = c * T + p
            if src_t < T:
                SX[c * T + int(_INV_PI[src_t]), dst] = 1.0
            else:
                SP[c * HZ + (src_t - T), dst] = 1.0
    return jnp.asarray(SX, jnp.bfloat16), jnp.asarray(SP, jnp.bfloat16)


def _pack_params(raw):
    w1_l, b1_l, w2_l, b2_l = [], [], [], []
    for k in range(K_STACKS):
        blocks = raw[k]["blocks"]
        for lvl in range(L_LEVELS):
            tc = T // (2 ** (lvl + 1))
            slots_a, slots_b = [], []
            for pos in range(2 ** lvl):
                path = [(pos >> (lvl - 1 - i)) & 1 for i in range(lvl)]
                phi, psi, rho, eta = blocks[lvl][pos]
                # group A: phi gates odd branch, psi gates even branch
                slots_a.append((phi, path + [0], path + [1], 1.0))
                slots_a.append((psi, path + [1], path + [0], 1.0))
                # group B: oe = s_even + rho(s_odd); oo = s_odd - eta(s_even)
                slots_b.append((rho, path + [1], path + [0], 1.0))
                slots_b.append((eta, path + [0], path + [1], -1.0))
            for slots in (slots_a, slots_b):
                W1, B1, W2, B2 = _pack_group(slots, tc)
                w1_l.append(W1); b1_l.append(B1)
                w2_l.append(W2); b2_l.append(B2)

    wp_l, bp_l = [], []
    for k in range(K_STACKS):
        wp, bp = raw[k]["proj"]
        wp_perm = wp[_PI, :]                           # fold inverse tree perm
        wp_l.append(jnp.kron(jnp.eye(C, dtype=jnp.float32), wp_perm))
        bp_l.append(jnp.tile(bp, (1, C)))

    sx, sp = _build_shift()
    return {
        "w1": jnp.stack(w1_l).astype(jnp.bfloat16),    # [NCONV, 64, 128]
        "b1": jnp.stack(b1_l),                         # [NCONV, 1, 128]
        "w2": jnp.stack(w2_l).astype(jnp.bfloat16),    # [NCONV, 128, 64]
        "b2": jnp.stack(b2_l),                         # [NCONV, 1, 64]
        "wp": jnp.stack(wp_l).astype(jnp.bfloat16),    # [K, 64, 16]
        "bp": jnp.stack(bp_l),                         # [K, 1, 16]
        "sx": sx, "sp": sp,
    }


# ===================== pure-JAX reference (original structure) ==============
def _bf16_dot(a, w):
    # mirror the kernel's precision: bf16 matmul inputs, f32 accumulation
    return jnp.dot(a.astype(jnp.bfloat16), w.astype(jnp.bfloat16),
                   preferred_element_type=jnp.float32)


def _sci_block_ref(block, xe, xo):
    B_, C_, t = xe.shape
    xef, xof = xe.reshape(B_, C_ * t), xo.reshape(B_, C_ * t)

    def inter(i, v):
        w1, b1, w2, b2 = block[i]
        y = _bf16_dot(v, conv1d_to_matrix(w1, t).T) + jnp.repeat(b1, t)[None, :]
        y = jnp.where(y > 0, y, 0.01 * y)
        y = _bf16_dot(y, conv1d_to_matrix(w2, t).T) + jnp.repeat(b2, t)[None, :]
        return jnp.tanh(y)

    s_odd = xof * jnp.exp(inter(0, xef))
    s_even = xef * jnp.exp(inter(1, xof))
    oe = s_even + inter(2, s_odd)
    oo = s_odd - inter(3, s_even)
    return oe.reshape(B_, C_, t), oo.reshape(B_, C_, t)


def _interleave(e, o):
    B_, C_, t = e.shape
    return jnp.stack([e, o], axis=-1).reshape(B_, C_, 2 * t)


def _sci_tree_ref(blocks, x, level, pos):
    xe, xo = x[:, :, 0::2], x[:, :, 1::2]
    e, o = _sci_block_ref(blocks[level][pos], xe, xo)
    if level == L_LEVELS - 1:
        return _interleave(e, o)
    return _interleave(_sci_tree_ref(blocks, e, level + 1, 2 * pos),
                       _sci_tree_ref(blocks, o, level + 1, 2 * pos + 1))


def _sci_net_ref(net, x):
    y = _sci_tree_ref(net["blocks"], x, 0, 0) + x
    wp, bp = net["proj"]
    B_, C_, T_ = y.shape
    return (_bf16_dot(y.reshape(B_ * C_, T_), wp) + bp).reshape(B_, C_, HZ)


def _stacked_ref(raw, x):
    preds, xj = [], x
    for j in range(K_STACKS):
        p = _sci_net_ref(raw[j], xj)
        preds.append(p)
        xj = jnp.concatenate([xj, p], axis=2)[:, :, HZ:T + HZ]
        # mirror the kernel, whose rolling-window state is bf16-rounded
        xj = xj.astype(jnp.bfloat16).astype(jnp.float32)
    return jnp.concatenate(preds, axis=1)


# ==================================== main ==================================
if __name__ == "__main__":
    root = jax.random.PRNGKey(0)
    pkey, xkey = jax.random.split(root)
    raw = _init_raw(pkey)
    packed = _pack_params(raw)
    x = jax.random.normal(xkey, (BATCH, C, T), jnp.float32)

    fwd = jax.jit(stacked_sci_pallas)
    out = jax.block_until_ready(fwd(packed, x))
    assert out.shape == (BATCH, K_STACKS * C, HZ), out.shape

    ref = _stacked_ref(raw, x)
    err = float(jnp.max(jnp.abs(out - ref)))
    if not err < 3e-2:
        raise SystemExit(f"mismatch vs pure-JAX reference: max abs err {err}")
    print("KERNEL_OK")
</pallas_src>

<mosaic_0001>
module attributes {stable_mosaic.version = 11 : i64} {
  func.func @_stacked_sci_kernel(%arg0: memref<2x64xf32, #tpu.memory_space<vmem>>, %arg1: memref<8x64x128xbf16, #tpu.memory_space<vmem>>, %arg2: memref<8x1x128xf32, #tpu.memory_space<vmem>>, %arg3: memref<8x128x64xbf16, #tpu.memory_space<vmem>>, %arg4: memref<8x1x64xf32, #tpu.memory_space<vmem>>, %arg5: memref<2x64x16xbf16, #tpu.memory_space<vmem>>, %arg6: memref<2x1x16xf32, #tpu.memory_space<vmem>>, %arg7: memref<64x64xbf16, #tpu.memory_space<vmem>>, %arg8: memref<16x64xbf16, #tpu.memory_space<vmem>>, %arg9: memref<2x32xf32, #tpu.memory_space<vmem>>) attributes {dimension_semantics = [], scalar_prefetch = 0 : i64, scratch_operands = 0 : i64, tpu.core_type = #tpu.core_type<tc>} {
    %c0 = arith.constant 0 : index
    %c0_0 = arith.constant 0 : index
    %0 = vector.load %arg0[%c0, %c0_0] : memref<2x64xf32, #tpu.memory_space<vmem>>, vector<2x64xf32>
    %1 = arith.truncf %0 : vector<2x64xf32> to vector<2x64xbf16>
    %c0_1 = arith.constant 0 : index
    %c0_2 = arith.constant 0 : index
    %c0_3 = arith.constant 0 : index
    %2 = vector.load %arg1[%c0_1, %c0_2, %c0_3] : memref<8x64x128xbf16, #tpu.memory_space<vmem>>, vector<1x64x128xbf16>
    %3 = vector.shape_cast %2 : vector<1x64x128xbf16> to vector<64x128xbf16>
    %cst = arith.constant dense<0.000000e+00> : vector<2x128xf32>
    %4 = tpu.matmul %1, %3, %cst {dimension_numbers = #tpu.dot_dimension_numbers<[1], [0], [0], [1], [0, 0, 1, 1], [], []>} : vector<2x64xbf16>, vector<64x128xbf16>, vector<2x128xf32> -> vector<2x128xf32>
    %c0_4 = arith.constant 0 : index
    %c0_5 = arith.constant 0 : index
    %c0_6 = arith.constant 0 : index
    %5 = vector.load %arg2[%c0_4, %c0_5, %c0_6] : memref<8x1x128xf32, #tpu.memory_space<vmem>>, vector<1x1x128xf32>
    %6 = vector.shape_cast %5 : vector<1x1x128xf32> to vector<1x128xf32>
    %7 = vector.broadcast %6 : vector<1x128xf32> to vector<2x128xf32>
    %8 = arith.addf %4, %7 : vector<2x128xf32>
    %cst_7 = arith.constant 0.000000e+00 : f32
    %9 = vector.broadcast %cst_7 : f32 to vector<2x128xf32>
    %10 = arith.cmpf ogt, %8, %9 : vector<2x128xf32>
    %cst_8 = arith.constant 0.00999999977 : f32
    %11 = vector.broadcast %cst_8 : f32 to vector<2x128xf32>
    %12 = arith.mulf %11, %8 : vector<2x128xf32>
    %13 = arith.select %10, %8, %12 : vector<2x128xi1>, vector<2x128xf32>
    %14 = arith.truncf %13 : vector<2x128xf32> to vector<2x128xbf16>
    %c0_9 = arith.constant 0 : index
    %c0_10 = arith.constant 0 : index
    %c0_11 = arith.constant 0 : index
    %15 = vector.load %arg3[%c0_9, %c0_10, %c0_11] : memref<8x128x64xbf16, #tpu.memory_space<vmem>>, vector<1x128x64xbf16>
    %16 = vector.shape_cast %15 : vector<1x128x64xbf16> to vector<128x64xbf16>
    %cst_12 = arith.constant dense<0.000000e+00> : vector<2x64xf32>
    %17 = tpu.matmul %14, %16, %cst_12 {dimension_numbers = #tpu.dot_dimension_numbers<[1], [0], [0], [1], [0, 0, 1, 1], [], []>} : vector<2x128xbf16>, vector<128x64xbf16>, vector<2x64xf32> -> vector<2x64xf32>
    %c0_13 = arith.constant 0 : index
    %c0_14 = arith.constant 0 : index
    %c0_15 = arith.constant 0 : index
    %18 = vector.load %arg4[%c0_13, %c0_14, %c0_15] : memref<8x1x64xf32, #tpu.memory_space<vmem>>, vector<1x1x64xf32>
    %19 = vector.shape_cast %18 : vector<1x1x64xf32> to vector<1x64xf32>
    %20 = vector.broadcast %19 : vector<1x64xf32> to vector<2x64xf32>
    %21 = arith.addf %17, %20 : vector<2x64xf32>
    %22 = math.tanh %21 : vector<2x64xf32>
    %23 = math.exp %22 : vector<2x64xf32>
    %24 = arith.mulf %0, %23 : vector<2x64xf32>
    %25 = arith.truncf %24 : vector<2x64xf32> to vector<2x64xbf16>
    %c1 = arith.constant 1 : index
    %c0_16 = arith.constant 0 : index
    %c0_17 = arith.constant 0 : index
    %26 = vector.load %arg1[%c1, %c0_16, %c0_17] : memref<8x64x128xbf16, #tpu.memory_space<vmem>>, vector<1x64x128xbf16>
    %27 = vector.shape_cast %26 : vector<1x64x128xbf16> to vector<64x128xbf16>
    %cst_18 = arith.constant dense<0.000000e+00> : vector<2x128xf32>
    %28 = tpu.matmul %25, %27, %cst_18 {dimension_numbers = #tpu.dot_dimension_numbers<[1], [0], [0], [1], [0, 0, 1, 1], [], []>} : vector<2x64xbf16>, vector<64x128xbf16>, vector<2x128xf32> -> vector<2x128xf32>
    %c1_19 = arith.constant 1 : index
    %c0_20 = arith.constant 0 : index
    %c0_21 = arith.constant 0 : index
    %29 = vector.load %arg2[%c1_19, %c0_20, %c0_21] : memref<8x1x128xf32, #tpu.memory_space<vmem>>, vector<1x1x128xf32>
    %30 = vector.shape_cast %29 : vector<1x1x128xf32> to vector<1x128xf32>
    %31 = vector.broadcast %30 : vector<1x128xf32> to vector<2x128xf32>
    %32 = arith.addf %28, %31 : vector<2x128xf32>
    %cst_22 = arith.constant 0.000000e+00 : f32
    %33 = vector.broadcast %cst_22 : f32 to vector<2x128xf32>
    %34 = arith.cmpf ogt, %32, %33 : vector<2x128xf32>
    %cst_23 = arith.constant 0.00999999977 : f32
    %35 = vector.broadcast %cst_23 : f32 to vector<2x128xf32>
    %36 = arith.mulf %35, %32 : vector<2x128xf32>
    %37 = arith.select %34, %32, %36 : vector<2x128xi1>, vector<2x128xf32>
    %38 = arith.truncf %37 : vector<2x128xf32> to vector<2x128xbf16>
    %c1_24 = arith.constant 1 : index
    %c0_25 = arith.constant 0 : index
    %c0_26 = arith.constant 0 : index
    %39 = vector.load %arg3[%c1_24, %c0_25, %c0_26] : memref<8x128x64xbf16, #tpu.memory_space<vmem>>, vector<1x128x64xbf16>
    %40 = vector.shape_cast %39 : vector<1x128x64xbf16> to vector<128x64xbf16>
    %cst_27 = arith.constant dense<0.000000e+00> : vector<2x64xf32>
    %41 = tpu.matmul %38, %40, %cst_27 {dimension_numbers = #tpu.dot_dimension_numbers<[1], [0], [0], [1], [0, 0, 1, 1], [], []>} : vector<2x128xbf16>, vector<128x64xbf16>, vector<2x64xf32> -> vector<2x64xf32>
    %c1_28 = arith.constant 1 : index
    %c0_29 = arith.constant 0 : index
    %c0_30 = arith.constant 0 : index
    %42 = vector.load %arg4[%c1_28, %c0_29, %c0_30] : memref<8x1x64xf32, #tpu.memory_space<vmem>>, vector<1x1x64xf32>
    %43 = vector.shape_cast %42 : vector<1x1x64xf32> to vector<1x64xf32>
    %44 = vector.broadcast %43 : vector<1x64xf32> to vector<2x64xf32>
    %45 = arith.addf %41, %44 : vector<2x64xf32>
    %46 = math.tanh %45 : vector<2x64xf32>
    %47 = arith.addf %24, %46 : vector<2x64xf32>
    %48 = arith.truncf %47 : vector<2x64xf32> to vector<2x64xbf16>
    %c2 = arith.constant 2 : index
    %c0_31 = arith.constant 0 : index
    %c0_32 = arith.constant 0 : index
    %49 = vector.load %arg1[%c2, %c0_31, %c0_32] : memref<8x64x128xbf16, #tpu.memory_space<vmem>>, vector<1x64x128xbf16>
    %50 = vector.shape_cast %49 : vector<1x64x128xbf16> to vector<64x128xbf16>
    %cst_33 = arith.constant dense<0.000000e+00> : vector<2x128xf32>
    %51 = tpu.matmul %48, %50, %cst_33 {dimension_numbers = #tpu.dot_dimension_numbers<[1], [0], [0], [1], [0, 0, 1, 1], [], []>} : vector<2x64xbf16>, vector<64x128xbf16>, vector<2x128xf32> -> vector<2x128xf32>
    %c2_34 = arith.constant 2 : index
    %c0_35 = arith.constant 0 : index
    %c0_36 = arith.constant 0 : index
    %52 = vector.load %arg2[%c2_34, %c0_35, %c0_36] : memref<8x1x128xf32, #tpu.memory_space<vmem>>, vector<1x1x128xf32>
    %53 = vector.shape_cast %52 : vector<1x1x128xf32> to vector<1x128xf32>
    %54 = vector.broadcast %53 : vector<1x128xf32> to vector<2x128xf32>
    %55 = arith.addf %51, %54 : vector<2x128xf32>
    %cst_37 = arith.constant 0.000000e+00 : f32
    %56 = vector.broadcast %cst_37 : f32 to vector<2x128xf32>
    %57 = arith.cmpf ogt, %55, %56 : vector<2x128xf32>
    %cst_38 = arith.constant 0.00999999977 : f32
    %58 = vector.broadcast %cst_38 : f32 to vector<2x128xf32>
    %59 = arith.mulf %58, %55 : vector<2x128xf32>
    %60 = arith.select %57, %55, %59 : vector<2x128xi1>, vector<2x128xf32>
    %61 = arith.truncf %60 : vector<2x128xf32> to vector<2x128xbf16>
    %c2_39 = arith.constant 2 : index
    %c0_40 = arith.constant 0 : index
    %c0_41 = arith.constant 0 : index
    %62 = vector.load %arg3[%c2_39, %c0_40, %c0_41] : memref<8x128x64xbf16, #tpu.memory_space<vmem>>, vector<1x128x64xbf16>
    %63 = vector.shape_cast %62 : vector<1x128x64xbf16> to vector<128x64xbf16>
    %cst_42 = arith.constant dense<0.000000e+00> : vector<2x64xf32>
    %64 = tpu.matmul %61, %63, %cst_42 {dimension_numbers = #tpu.dot_dimension_numbers<[1], [0], [0], [1], [0, 0, 1, 1], [], []>} : vector<2x128xbf16>, vector<128x64xbf16>, vector<2x64xf32> -> vector<2x64xf32>
    %c2_43 = arith.constant 2 : index
    %c0_44 = arith.constant 0 : index
    %c0_45 = arith.constant 0 : index
    %65 = vector.load %arg4[%c2_43, %c0_44, %c0_45] : memref<8x1x64xf32, #tpu.memory_space<vmem>>, vector<1x1x64xf32>
    %66 = vector.shape_cast %65 : vector<1x1x64xf32> to vector<1x64xf32>
    %67 = vector.broadcast %66 : vector<1x64xf32> to vector<2x64xf32>
    %68 = arith.addf %64, %67 : vector<2x64xf32>
    %69 = math.tanh %68 : vector<2x64xf32>
    %70 = math.exp %69 : vector<2x64xf32>
    %71 = arith.mulf %47, %70 : vector<2x64xf32>
    %72 = arith.truncf %71 : vector<2x64xf32> to vector<2x64xbf16>
    %c3 = arith.constant 3 : index
    %c0_46 = arith.constant 0 : index
    %c0_47 = arith.constant 0 : index
    %73 = vector.load %arg1[%c3, %c0_46, %c0_47] : memref<8x64x128xbf16, #tpu.memory_space<vmem>>, vector<1x64x128xbf16>
    %74 = vector.shape_cast %73 : vector<1x64x128xbf16> to vector<64x128xbf16>
    %cst_48 = arith.constant dense<0.000000e+00> : vector<2x128xf32>
    %75 = tpu.matmul %72, %74, %cst_48 {dimension_numbers = #tpu.dot_dimension_numbers<[1], [0], [0], [1], [0, 0, 1, 1], [], []>} : vector<2x64xbf16>, vector<64x128xbf16>, vector<2x128xf32> -> vector<2x128xf32>
    %c3_49 = arith.constant 3 : index
    %c0_50 = arith.constant 0 : index
    %c0_51 = arith.constant 0 : index
    %76 = vector.load %arg2[%c3_49, %c0_50, %c0_51] : memref<8x1x128xf32, #tpu.memory_space<vmem>>, vector<1x1x128xf32>
    %77 = vector.shape_cast %76 : vector<1x1x128xf32> to vector<1x128xf32>
    %78 = vector.broadcast %77 : vector<1x128xf32> to vector<2x128xf32>
    %79 = arith.addf %75, %78 : vector<2x128xf32>
    %cst_52 = arith.constant 0.000000e+00 : f32
    %80 = vector.broadcast %cst_52 : f32 to vector<2x128xf32>
    %81 = arith.cmpf ogt, %79, %80 : vector<2x128xf32>
    %cst_53 = arith.constant 0.00999999977 : f32
    %82 = vector.broadcast %cst_53 : f32 to vector<2x128xf32>
    %83 = arith.mulf %82, %79 : vector<2x128xf32>
    %84 = arith.select %81, %79, %83 : vector<2x128xi1>, vector<2x128xf32>
    %85 = arith.truncf %84 : vector<2x128xf32> to vector<2x128xbf16>
    %c3_54 = arith.constant 3 : index
    %c0_55 = arith.constant 0 : index
    %c0_56 = arith.constant 0 : index
    %86 = vector.load %arg3[%c3_54, %c0_55, %c0_56] : memref<8x128x64xbf16, #tpu.memory_space<vmem>>, vector<1x128x64xbf16>
    %87 = vector.shape_cast %86 : vector<1x128x64xbf16> to vector<128x64xbf16>
    %cst_57 = arith.constant dense<0.000000e+00> : vector<2x64xf32>
    %88 = tpu.matmul %85, %87, %cst_57 {dimension_numbers = #tpu.dot_dimension_numbers<[1], [0], [0], [1], [0, 0, 1, 1], [], []>} : vector<2x128xbf16>, vector<128x64xbf16>, vector<2x64xf32> -> vector<2x64xf32>
    %c3_58 = arith.constant 3 : index
    %c0_59 = arith.constant 0 : index
    %c0_60 = arith.constant 0 : index
    %89 = vector.load %arg4[%c3_58, %c0_59, %c0_60] : memref<8x1x64xf32, #tpu.memory_space<vmem>>, vector<1x1x64xf32>
    %90 = vector.shape_cast %89 : vector<1x1x64xf32> to vector<1x64xf32>
    %91 = vector.broadcast %90 : vector<1x64xf32> to vector<2x64xf32>
    %92 = arith.addf %88, %91 : vector<2x64xf32>
    %93 = math.tanh %92 : vector<2x64xf32>
    %94 = arith.addf %71, %93 : vector<2x64xf32>
    %95 = arith.addf %94, %0 : vector<2x64xf32>
    %96 = arith.truncf %95 : vector<2x64xf32> to vector<2x64xbf16>
    %c0_61 = arith.constant 0 : index
    %c0_62 = arith.constant 0 : index
    %c0_63 = arith.constant 0 : index
    %97 = vector.load %arg5[%c0_61, %c0_62, %c0_63] : memref<2x64x16xbf16, #tpu.memory_space<vmem>>, vector<1x64x16xbf16>
    %98 = vector.shape_cast %97 : vector<1x64x16xbf16> to vector<64x16xbf16>
    %cst_64 = arith.constant dense<0.000000e+00> : vector<2x16xf32>
    %99 = tpu.matmul %96, %98, %cst_64 {dimension_numbers = #tpu.dot_dimension_numbers<[1], [0], [0], [1], [0, 0, 1, 1], [], []>} : vector<2x64xbf16>, vector<64x16xbf16>, vector<2x16xf32> -> vector<2x16xf32>
    %c0_65 = arith.constant 0 : index
    %c0_66 = arith.constant 0 : index
    %c0_67 = arith.constant 0 : index
    %100 = vector.load %arg6[%c0_65, %c0_66, %c0_67] : memref<2x1x16xf32, #tpu.memory_space<vmem>>, vector<1x1x16xf32>
    %101 = vector.shape_cast %100 : vector<1x1x16xf32> to vector<1x16xf32>
    %102 = vector.broadcast %101 : vector<1x16xf32> to vector<2x16xf32>
    %103 = arith.addf %99, %102 : vector<2x16xf32>
    %104 = arith.truncf %0 : vector<2x64xf32> to vector<2x64xbf16>
    %c0_68 = arith.constant 0 : index
    %c0_69 = arith.constant 0 : index
    %105 = vector.load %arg7[%c0_68, %c0_69] : memref<64x64xbf16, #tpu.memory_space<vmem>>, vector<64x64xbf16>
    %cst_70 = arith.constant dense<0.000000e+00> : vector<2x64xf32>
    %106 = tpu.matmul %104, %105, %cst_70 {dimension_numbers = #tpu.dot_dimension_numbers<[1], [0], [0], [1], [0, 0, 1, 1], [], []>} : vector<2x64xbf16>, vector<64x64xbf16>, vector<2x64xf32> -> vector<2x64xf32>
    %107 = arith.truncf %103 : vector<2x16xf32> to vector<2x16xbf16>
    %c0_71 = arith.constant 0 : index
    %c0_72 = arith.constant 0 : index
    %108 = vector.load %arg8[%c0_71, %c0_72] : memref<16x64xbf16, #tpu.memory_space<vmem>>, vector<16x64xbf16>
    %cst_73 = arith.constant dense<0.000000e+00> : vector<2x64xf32>
    %109 = tpu.matmul %107, %108, %cst_73 {dimension_numbers = #tpu.dot_dimension_numbers<[1], [0], [0], [1], [0, 0, 1, 1], [], []>} : vector<2x16xbf16>, vector<16x64xbf16>, vector<2x64xf32> -> vector<2x64xf32>
    %110 = arith.addf %106, %109 : vector<2x64xf32>
    %111 = arith.truncf %110 : vector<2x64xf32> to vector<2x64xbf16>
    %c4 = arith.constant 4 : index
    %c0_74 = arith.constant 0 : index
    %c0_75 = arith.constant 0 : index
    %112 = vector.load %arg1[%c4, %c0_74, %c0_75] : memref<8x64x128xbf16, #tpu.memory_space<vmem>>, vector<1x64x128xbf16>
    %113 = vector.shape_cast %112 : vector<1x64x128xbf16> to vector<64x128xbf16>
    %cst_76 = arith.constant dense<0.000000e+00> : vector<2x128xf32>
    %114 = tpu.matmul %111, %113, %cst_76 {dimension_numbers = #tpu.dot_dimension_numbers<[1], [0], [0], [1], [0, 0, 1, 1], [], []>} : vector<2x64xbf16>, vector<64x128xbf16>, vector<2x128xf32> -> vector<2x128xf32>
    %c4_77 = arith.constant 4 : index
    %c0_78 = arith.constant 0 : index
    %c0_79 = arith.constant 0 : index
    %115 = vector.load %arg2[%c4_77, %c0_78, %c0_79] : memref<8x1x128xf32, #tpu.memory_space<vmem>>, vector<1x1x128xf32>
    %116 = vector.shape_cast %115 : vector<1x1x128xf32> to vector<1x128xf32>
    %117 = vector.broadcast %116 : vector<1x128xf32> to vector<2x128xf32>
    %118 = arith.addf %114, %117 : vector<2x128xf32>
    %cst_80 = arith.constant 0.000000e+00 : f32
    %119 = vector.broadcast %cst_80 : f32 to vector<2x128xf32>
    %120 = arith.cmpf ogt, %118, %119 : vector<2x128xf32>
    %cst_81 = arith.constant 0.00999999977 : f32
    %121 = vector.broadcast %cst_81 : f32 to vector<2x128xf32>
    %122 = arith.mulf %121, %118 : vector<2x128xf32>
    %123 = arith.select %120, %118, %122 : vector<2x128xi1>, vector<2x128xf32>
    %124 = arith.truncf %123 : vector<2x128xf32> to vector<2x128xbf16>
    %c4_82 = arith.constant 4 : index
    %c0_83 = arith.constant 0 : index
    %c0_84 = arith.constant 0 : index
    %125 = vector.load %arg3[%c4_82, %c0_83, %c0_84] : memref<8x128x64xbf16, #tpu.memory_space<vmem>>, vector<1x128x64xbf16>
    %126 = vector.shape_cast %125 : vector<1x128x64xbf16> to vector<128x64xbf16>
    %cst_85 = arith.constant dense<0.000000e+00> : vector<2x64xf32>
    %127 = tpu.matmul %124, %126, %cst_85 {dimension_numbers = #tpu.dot_dimension_numbers<[1], [0], [0], [1], [0, 0, 1, 1], [], []>} : vector<2x128xbf16>, vector<128x64xbf16>, vector<2x64xf32> -> vector<2x64xf32>
    %c4_86 = arith.constant 4 : index
    %c0_87 = arith.constant 0 : index
    %c0_88 = arith.constant 0 : index
    %128 = vector.load %arg4[%c4_86, %c0_87, %c0_88] : memref<8x1x64xf32, #tpu.memory_space<vmem>>, vector<1x1x64xf32>
    %129 = vector.shape_cast %128 : vector<1x1x64xf32> to vector<1x64xf32>
    %130 = vector.broadcast %129 : vector<1x64xf32> to vector<2x64xf32>
    %131 = arith.addf %127, %130 : vector<2x64xf32>
    %132 = math.tanh %131 : vector<2x64xf32>
    %133 = math.exp %132 : vector<2x64xf32>
    %134 = arith.mulf %110, %133 : vector<2x64xf32>
    %135 = arith.truncf %134 : vector<2x64xf32> to vector<2x64xbf16>
    %c5 = arith.constant 5 : index
    %c0_89 = arith.constant 0 : index
    %c0_90 = arith.constant 0 : index
    %136 = vector.load %arg1[%c5, %c0_89, %c0_90] : memref<8x64x128xbf16, #tpu.memory_space<vmem>>, vector<1x64x128xbf16>
    %137 = vector.shape_cast %136 : vector<1x64x128xbf16> to vector<64x128xbf16>
    %cst_91 = arith.constant dense<0.000000e+00> : vector<2x128xf32>
    %138 = tpu.matmul %135, %137, %cst_91 {dimension_numbers = #tpu.dot_dimension_numbers<[1], [0], [0], [1], [0, 0, 1, 1], [], []>} : vector<2x64xbf16>, vector<64x128xbf16>, vector<2x128xf32> -> vector<2x128xf32>
    %c5_92 = arith.constant 5 : index
    %c0_93 = arith.constant 0 : index
    %c0_94 = arith.constant 0 : index
    %139 = vector.load %arg2[%c5_92, %c0_93, %c0_94] : memref<8x1x128xf32, #tpu.memory_space<vmem>>, vector<1x1x128xf32>
    %140 = vector.shape_cast %139 : vector<1x1x128xf32> to vector<1x128xf32>
    %141 = vector.broadcast %140 : vector<1x128xf32> to vector<2x128xf32>
    %142 = arith.addf %138, %141 : vector<2x128xf32>
    %cst_95 = arith.constant 0.000000e+00 : f32
    %143 = vector.broadcast %cst_95 : f32 to vector<2x128xf32>
    %144 = arith.cmpf ogt, %142, %143 : vector<2x128xf32>
    %cst_96 = arith.constant 0.00999999977 : f32
    %145 = vector.broadcast %cst_96 : f32 to vector<2x128xf32>
    %146 = arith.mulf %145, %142 : vector<2x128xf32>
    %147 = arith.select %144, %142, %146 : vector<2x128xi1>, vector<2x128xf32>
    %148 = arith.truncf %147 : vector<2x128xf32> to vector<2x128xbf16>
    %c5_97 = arith.constant 5 : index
    %c0_98 = arith.constant 0 : index
    %c0_99 = arith.constant 0 : index
    %149 = vector.load %arg3[%c5_97, %c0_98, %c0_99] : memref<8x128x64xbf16, #tpu.memory_space<vmem>>, vector<1x128x64xbf16>
    %150 = vector.shape_cast %149 : vector<1x128x64xbf16> to vector<128x64xbf16>
    %cst_100 = arith.constant dense<0.000000e+00> : vector<2x64xf32>
    %151 = tpu.matmul %148, %150, %cst_100 {dimension_numbers = #tpu.dot_dimension_numbers<[1], [0], [0], [1], [0, 0, 1, 1], [], []>} : vector<2x128xbf16>, vector<128x64xbf16>, vector<2x64xf32> -> vector<2x64xf32>
    %c5_101 = arith.constant 5 : index
    %c0_102 = arith.constant 0 : index
    %c0_103 = arith.constant 0 : index
    %152 = vector.load %arg4[%c5_101, %c0_102, %c0_103] : memref<8x1x64xf32, #tpu.memory_space<vmem>>, vector<1x1x64xf32>
    %153 = vector.shape_cast %152 : vector<1x1x64xf32> to vector<1x64xf32>
    %154 = vector.broadcast %153 : vector<1x64xf32> to vector<2x64xf32>
    %155 = arith.addf %151, %154 : vector<2x64xf32>
    %156 = math.tanh %155 : vector<2x64xf32>
    %157 = arith.addf %134, %156 : vector<2x64xf32>
    %158 = arith.truncf %157 : vector<2x64xf32> to vector<2x64xbf16>
    %c6 = arith.constant 6 : index
    %c0_104 = arith.constant 0 : index
    %c0_105 = arith.constant 0 : index
    %159 = vector.load %arg1[%c6, %c0_104, %c0_105] : memref<8x64x128xbf16, #tpu.memory_space<vmem>>, vector<1x64x128xbf16>
    %160 = vector.shape_cast %159 : vector<1x64x128xbf16> to vector<64x128xbf16>
    %cst_106 = arith.constant dense<0.000000e+00> : vector<2x128xf32>
    %161 = tpu.matmul %158, %160, %cst_106 {dimension_numbers = #tpu.dot_dimension_numbers<[1], [0], [0], [1], [0, 0, 1, 1], [], []>} : vector<2x64xbf16>, vector<64x128xbf16>, vector<2x128xf32> -> vector<2x128xf32>
    %c6_107 = arith.constant 6 : index
    %c0_108 = arith.constant 0 : index
    %c0_109 = arith.constant 0 : index
    %162 = vector.load %arg2[%c6_107, %c0_108, %c0_109] : memref<8x1x128xf32, #tpu.memory_space<vmem>>, vector<1x1x128xf32>
    %163 = vector.shape_cast %162 : vector<1x1x128xf32> to vector<1x128xf32>
    %164 = vector.broadcast %163 : vector<1x128xf32> to vector<2x128xf32>
    %165 = arith.addf %161, %164 : vector<2x128xf32>
    %cst_110 = arith.constant 0.000000e+00 : f32
    %166 = vector.broadcast %cst_110 : f32 to vector<2x128xf32>
    %167 = arith.cmpf ogt, %165, %166 : vector<2x128xf32>
    %cst_111 = arith.constant 0.00999999977 : f32
    %168 = vector.broadcast %cst_111 : f32 to vector<2x128xf32>
    %169 = arith.mulf %168, %165 : vector<2x128xf32>
    %170 = arith.select %167, %165, %169 : vector<2x128xi1>, vector<2x128xf32>
    %171 = arith.truncf %170 : vector<2x128xf32> to vector<2x128xbf16>
    %c6_112 = arith.constant 6 : index
    %c0_113 = arith.constant 0 : index
    %c0_114 = arith.constant 0 : index
    %172 = vector.load %arg3[%c6_112, %c0_113, %c0_114] : memref<8x128x64xbf16, #tpu.memory_space<vmem>>, vector<1x128x64xbf16>
    %173 = vector.shape_cast %172 : vector<1x128x64xbf16> to vector<128x64xbf16>
    %cst_115 = arith.constant dense<0.000000e+00> : vector<2x64xf32>
    %174 = tpu.matmul %171, %173, %cst_115 {dimension_numbers = #tpu.dot_dimension_numbers<[1], [0], [0], [1], [0, 0, 1, 1], [], []>} : vector<2x128xbf16>, vector<128x64xbf16>, vector<2x64xf32> -> vector<2x64xf32>
    %c6_116 = arith.constant 6 : index
    %c0_117 = arith.constant 0 : index
    %c0_118 = arith.constant 0 : index
    %175 = vector.load %arg4[%c6_116, %c0_117, %c0_118] : memref<8x1x64xf32, #tpu.memory_space<vmem>>, vector<1x1x64xf32>
    %176 = vector.shape_cast %175 : vector<1x1x64xf32> to vector<1x64xf32>
    %177 = vector.broadcast %176 : vector<1x64xf32> to vector<2x64xf32>
    %178 = arith.addf %174, %177 : vector<2x64xf32>
    %179 = math.tanh %178 : vector<2x64xf32>
    %180 = math.exp %179 : vector<2x64xf32>
    %181 = arith.mulf %157, %180 : vector<2x64xf32>
    %182 = arith.truncf %181 : vector<2x64xf32> to vector<2x64xbf16>
    %c7 = arith.constant 7 : index
    %c0_119 = arith.constant 0 : index
    %c0_120 = arith.constant 0 : index
    %183 = vector.load %arg1[%c7, %c0_119, %c0_120] : memref<8x64x128xbf16, #tpu.memory_space<vmem>>, vector<1x64x128xbf16>
    %184 = vector.shape_cast %183 : vector<1x64x128xbf16> to vector<64x128xbf16>
    %cst_121 = arith.constant dense<0.000000e+00> : vector<2x128xf32>
    %185 = tpu.matmul %182, %184, %cst_121 {dimension_numbers = #tpu.dot_dimension_numbers<[1], [0], [0], [1], [0, 0, 1, 1], [], []>} : vector<2x64xbf16>, vector<64x128xbf16>, vector<2x128xf32> -> vector<2x128xf32>
    %c7_122 = arith.constant 7 : index
    %c0_123 = arith.constant 0 : index
    %c0_124 = arith.constant 0 : index
    %186 = vector.load %arg2[%c7_122, %c0_123, %c0_124] : memref<8x1x128xf32, #tpu.memory_space<vmem>>, vector<1x1x128xf32>
    %187 = vector.shape_cast %186 : vector<1x1x128xf32> to vector<1x128xf32>
    %188 = vector.broadcast %187 : vector<1x128xf32> to vector<2x128xf32>
    %189 = arith.addf %185, %188 : vector<2x128xf32>
    %cst_125 = arith.constant 0.000000e+00 : f32
    %190 = vector.broadcast %cst_125 : f32 to vector<2x128xf32>
    %191 = arith.cmpf ogt, %189, %190 : vector<2x128xf32>
    %cst_126 = arith.constant 0.00999999977 : f32
    %192 = vector.broadcast %cst_126 : f32 to vector<2x128xf32>
    %193 = arith.mulf %192, %189 : vector<2x128xf32>
    %194 = arith.select %191, %189, %193 : vector<2x128xi1>, vector<2x128xf32>
    %195 = arith.truncf %194 : vector<2x128xf32> to vector<2x128xbf16>
    %c7_127 = arith.constant 7 : index
    %c0_128 = arith.constant 0 : index
    %c0_129 = arith.constant 0 : index
    %196 = vector.load %arg3[%c7_127, %c0_128, %c0_129] : memref<8x128x64xbf16, #tpu.memory_space<vmem>>, vector<1x128x64xbf16>
    %197 = vector.shape_cast %196 : vector<1x128x64xbf16> to vector<128x64xbf16>
    %cst_130 = arith.constant dense<0.000000e+00> : vector<2x64xf32>
    %198 = tpu.matmul %195, %197, %cst_130 {dimension_numbers = #tpu.dot_dimension_numbers<[1], [0], [0], [1], [0, 0, 1, 1], [], []>} : vector<2x128xbf16>, vector<128x64xbf16>, vector<2x64xf32> -> vector<2x64xf32>
    %c7_131 = arith.constant 7 : index
    %c0_132 = arith.constant 0 : index
    %c0_133 = arith.constant 0 : index
    %199 = vector.load %arg4[%c7_131, %c0_132, %c0_133] : memref<8x1x64xf32, #tpu.memory_space<vmem>>, vector<1x1x64xf32>
    %200 = vector.shape_cast %199 : vector<1x1x64xf32> to vector<1x64xf32>
    %201 = vector.broadcast %200 : vector<1x64xf32> to vector<2x64xf32>
    %202 = arith.addf %198, %201 : vector<2x64xf32>
    %203 = math.tanh %202 : vector<2x64xf32>
    %204 = arith.addf %181, %203 : vector<2x64xf32>
    %205 = arith.addf %204, %110 : vector<2x64xf32>
    %206 = arith.truncf %205 : vector<2x64xf32> to vector<2x64xbf16>
    %c1_134 = arith.constant 1 : index
    %c0_135 = arith.constant 0 : index
    %c0_136 = arith.constant 0 : index
    %207 = vector.load %arg5[%c1_134, %c0_135, %c0_136] : memref<2x64x16xbf16, #tpu.memory_space<vmem>>, vector<1x64x16xbf16>
    %208 = vector.shape_cast %207 : vector<1x64x16xbf16> to vector<64x16xbf16>
    %cst_137 = arith.constant dense<0.000000e+00> : vector<2x16xf32>
    %209 = tpu.matmul %206, %208, %cst_137 {dimension_numbers = #tpu.dot_dimension_numbers<[1], [0], [0], [1], [0, 0, 1, 1], [], []>} : vector<2x64xbf16>, vector<64x16xbf16>, vector<2x16xf32> -> vector<2x16xf32>
    %c1_138 = arith.constant 1 : index
    %c0_139 = arith.constant 0 : index
    %c0_140 = arith.constant 0 : index
    %210 = vector.load %arg6[%c1_138, %c0_139, %c0_140] : memref<2x1x16xf32, #tpu.memory_space<vmem>>, vector<1x1x16xf32>
    %211 = vector.shape_cast %210 : vector<1x1x16xf32> to vector<1x16xf32>
    %212 = vector.broadcast %211 : vector<1x16xf32> to vector<2x16xf32>
    %213 = arith.addf %209, %212 : vector<2x16xf32>
    %214 = tpu.concatenate %103, %213 in 1 : vector<2x16xf32>, vector<2x16xf32> -> vector<2x32xf32>
    %c0_141 = arith.constant 0 : index
    %c0_142 = arith.constant 0 : index
    %215 = vector.load %arg9[%c0_141, %c0_142] : memref<2x32xf32, #tpu.memory_space<vmem>>, vector<2x32xf32>
    tpu.vector_store %arg9[%c0_141, %c0_142], %214 {strides = array<i32>} : memref<2x32xf32, #tpu.memory_space<vmem>>, vector<2x32xf32>,
    return
  }
}

</mosaic_0001>

<bundles_post_ra>
// kernel: stacked_sci_pallas.1
= control target key start
LH: loop header
LB: loop body
LE: loop exit
PB: predicated region body
PF: predicated region fallthrough
CT: control target
= control target key end

     0   :  { %v2870_v0 = vmov 0.0   ;;  %vm2871_vm0 = vmmov 0   ;;  %vm74_vm1 = vcmask 523264   ;;  %vm952_vm6 = vcmask 130048   ;;  %s3503_s1 = inlined_call_operand.vmem [shape: bf16[8,64,128], index: 1, kind: input, shape index: {}]   ;;  %s3504_s3 = inlined_call_operand.vmem [shape: bf16[8,128,64], index: 3, kind: input, shape index: {}]   ;;  %s3505_s0 = inlined_call_operand.vmem [shape: f32[2,64], index: 0, kind: input, shape index: {}]   ;;  %s3506_s2 = inlined_call_operand.vmem [shape: f32[8,1,128], index: 2, kind: input, shape index: {}]   ;;  %s3507_s4 = inlined_call_operand.vmem [shape: f32[8,1,64], index: 4, kind: input, shape index: {}]   ;;  %s3508_s5 = inlined_call_operand.vmem [shape: bf16[2,64,16], index: 5, kind: input, shape index: {}]   ;;  %s3509_s8 = inlined_call_operand.vmem [shape: bf16[16,64], index: 8, kind: input, shape index: {}]   ;;  %s3510_s7 = inlined_call_operand.vmem [shape: bf16[64,64], index: 7, kind: input, shape index: {}]   ;;  %s3511_s6 = inlined_call_operand.vmem [shape: f32[2,1,16], index: 6, kind: input, shape index: {}]   ;;  %s3512_s9 = inlined_call_operand.vmem [shape: f32[2,32], index: 9, kind: output, shape index: {}]  }
   0x1   :  { %2436 = vmatprep.subr.bf16.mxu0 %v2870_v0  ;;  %v2737_v1 = vld [vmem:[%s3503_s1 + $0x18] sm:$0xff]   ;;  %2444 = vmatprep.mubr.msk.bf16.mxu0 %vm2871_vm0, %v2870_v0  ;;  %v2738_v2 = vld [vmem:[%s3503_s1 + $0x10] sm:$0xff]   ;;  %v2739_v4 = vld [vmem:[%s3503_s1 + $0x8] sm:$0xff]   ;;  %vm1971_vm11 = vcmask 254976  }
   0x2   :  { %2448 = vmatprep.subr.bf16.mxu1 %v2870_v0  ;;  %2464 = vmatprep.mubr.msk.bf16.mxu1 %vm2871_vm0, %v2870_v0  ;;  %v2741_v3 = vld [vmem:[%s3504_s3 + $0x38] sm:$0xff]   ;;  %v2742_v5 = vld [vmem:[%s3504_s3 + $0x30] sm:$0xff]   ;;  %v2740_v6 = vld [vmem:[%s3503_s1] sm:$0xff]  }
   0x3   :  { %2437 = vmatpush3.bf16.msra.mxu0 %v2737_v1  ;;  %2449 = vmatpush3.bf16.msra.mxu1 %v2741_v3  ;;  %v2953_v7 = vld [vmem:[%s3505_s0] sm:$0x3]  ;;  %v2743_v8 = vld [vmem:[%s3504_s3 + $0x28] sm:$0xff]   ;;  %v2745_v11 = vld [vmem:[%s3504_s3 + $0x18] sm:$0xff]  }
   0x4   :  { %2438 = vmatprep.subr.bf16.mxu0 %v2870_v0  ;;  %2450 = vmatprep.subr.bf16.mxu1 %v2870_v0  ;;  %v2962_v9 = vpack.c.bf16 %v2953_v7, %v2953_v7  ;;  %v2744_v10 = vld [vmem:[%s3504_s3 + $0x20] sm:$0xff]   ;;  %v2746_v12 = vld [vmem:[%s3504_s3 + $0x10] sm:$0xff]   ;;  %v2747_v13 = vld [vmem:[%s3504_s3 + $0x8] sm:$0xff]  }
   0x5   :  { %v2748_v14 = vld [vmem:[%s3504_s3] sm:$0xff]   ;;  %v2749_v24 = vld [vmem:[%s3503_s1 + $0x38] sm:$0xff]   ;;  %v2750_v25 = vld [vmem:[%s3503_s1 + $0x30] sm:$0xff]  }
   0x6   :  { %v1977_v15 = vld [vmem:[%s3506_s2] ss:$0 sm:$0xff]  ;;  %v2751_v26 = vld [vmem:[%s3503_s1 + $0x28] sm:$0xff]   ;;  %v2753_v38 = vld [vmem:[%s3504_s3 + $0x78] sm:$0xff]  }
   0x7   :  { %2439 = vmatpush3.bf16.msra.mxu0 %v2738_v2  ;;  %2451 = vmatpush3.bf16.msra.mxu1 %v2742_v5  ;;  %v2752_v27 = vld [vmem:[%s3503_s1 + $0x20] sm:$0xff]   ;;  %v2754_v40 = vld [vmem:[%s3504_s3 + $0x70] sm:$0xff]   ;;  %v2755_v41 = vld [vmem:[%s3504_s3 + $0x68] sm:$0xff]  }
   0x8   :  { %2440 = vmatprep.subr.bf16.mxu0 %v2870_v0  ;;  %2452 = vmatprep.subr.bf16.mxu1 %v2870_v0  ;;  %v1983_v28 = vld [vmem:[%s3507_s4] ss:$0 sm:$0xff]  ;;  %v2757_v43 = vld [vmem:[%s3504_s3 + $0x58] sm:$0xff]   ;;  %v2758_v44 = vld [vmem:[%s3504_s3 + $0x50] sm:$0xff]  }
   0x9   :  { %v2756_v42 = vld [vmem:[%s3504_s3 + $0x60] sm:$0xff]   ;;  %v2759_v45 = vld [vmem:[%s3504_s3 + $0x48] sm:$0xff]   ;;  %v2761_v56 = vld [vmem:[%s3503_s1 + $0x58] sm:$0xff]  }
   0xa   :  { %v2760_v46 = vld [vmem:[%s3504_s3 + $0x40] sm:$0xff]   ;;  %v2762_v57 = vld [vmem:[%s3503_s1 + $0x50] sm:$0xff]   ;;  %v2763_v58 = vld [vmem:[%s3503_s1 + $0x48] sm:$0xff]  }
   0xb   :  { %2441 = vmatpush3.bf16.msra.mxu0 %v2739_v4  ;;  %2453 = vmatpush3.bf16.msra.mxu1 %v2743_v8  ;;  %v2001_v47 = vld [vmem:[%s3506_s2 + $0x1] ss:$0 sm:$0xff]  ;;  %v2765_v5 = vld [vmem:[%s3504_s3 + $0xb8] sm:$0xff]   ;;  %v2766_v8 = vld [vmem:[%s3504_s3 + $0xb0] sm:$0xff]  }
   0xc   :  { %2442 = vmatprep.subr.bf16.mxu0 %v2870_v0  ;;  %2454 = vmatprep.subr.bf16.mxu1 %v2870_v0  ;;  %v2764_v59 = vld [vmem:[%s3503_s1 + $0x40] sm:$0xff]  }
   0xd   :  { %v2024_v60 = vld [vmem:[%s3507_s4 + $0x1] ss:$0 sm:$0xff] }
   0xf   :  { %2443 = vmatpush3.bf16.msra.mxu0 %v2740_v6  ;;  %2455 = vmatpush3.bf16.msra.mxu1 %v2744_v10  ;;  %v2767_v10 = vld [vmem:[%s3504_s3 + $0xa8] sm:$0xff]  }
  0x10   :  { %2468 = vmatprep.subr.bf16.mxu0 %v2870_v0  ;;  %2456 = vmatprep.subr.bf16.mxu1 %v2870_v0 }
  0x12   :  { %2445 = vmatmul.mubr.msk.bf16.vlgmr.msra.gmra.mxu0 %vm74_vm1, %v2962_v9 }
  0x13   :  { %2476 = vmatprep.mubr.msk.bf16.mxu0 %vm2871_vm0, %v2870_v0  ;;  %2457 = vmatpush3.bf16.msra.mxu1 %v2745_v11  ;;  %v2768_v11 = vld [vmem:[%s3504_s3 + $0xa0] sm:$0xff]  }
  0x14   :  { %2458 = vmatprep.subr.bf16.mxu1 %v2870_v0  ;;  %2469 = vmatpush3.bf16.msra.mxu0 %v2749_v24 }
  0x15   :  { %2470 = vmatprep.subr.bf16.mxu0 %v2870_v0 }
  0x17   :  { %2459 = vmatpush3.bf16.msra.mxu1 %v2746_v12  ;;  %v2769_v12 = vld [vmem:[%s3504_s3 + $0x98] sm:$0xff]  }
  0x18   :  { %2460 = vmatprep.subr.bf16.mxu1 %v2870_v0  ;;  %2471 = vmatpush3.bf16.msra.mxu0 %v2750_v25  ;;  %v2773_v25 = vld [vmem:[%s3503_s1 + $0x78] sm:$0xff]  }
  0x19   :  { %2472 = vmatprep.subr.bf16.mxu0 %v2870_v0 }
  0x1b   :  { %2461 = vmatpush3.bf16.msra.mxu1 %v2747_v13  ;;  %v2770_v13 = vld [vmem:[%s3504_s3 + $0x90] sm:$0xff]  }
  0x1c   :  { %2462 = vmatprep.subr.bf16.mxu1 %v2870_v0  ;;  %2473 = vmatpush3.bf16.msra.mxu0 %v2751_v26  ;;  %v2774_v26 = vld [vmem:[%s3503_s1 + $0x70] sm:$0xff]  }
  0x1d   :  { %2474 = vmatprep.subr.bf16.mxu0 %v2870_v0 }
  0x1f   :  { %2463 = vmatpush3.bf16.msra.mxu1 %v2748_v14  ;;  %v2771_v14 = vld [vmem:[%s3504_s3 + $0x88] sm:$0xff]  }
  0x20   :  { %2500 = vmatprep.subr.bf16.mxu1 %v2870_v0  ;;  %2475 = vmatpush3.bf16.msra.mxu0 %v2752_v27  ;;  %v2775_v27 = vld [vmem:[%s3503_s1 + $0x68] sm:$0xff]  }
  0x21   :  { %2480 = vmatprep.subr.bf16.mxu0 %v2870_v0 }
  0xd2   :  { %v112_v16 = vpop.f32.mrf.mxu0 }
  0xd3   :  { %v113_v17 = vadd.f32 %v1977_v15, %v112_v16  ;;  %v2772_v15 = vld [vmem:[%s3504_s3 + $0x80] sm:$0xff]  }
  0xd4   :  { %v2446_v18 = vpop.f32.mrf.mxu0  ;;  %v2042_v16 = vld [vmem:[%s3506_s2 + $0x2] ss:$0 sm:$0xff] }
  0xd5   :  { %vm118_vm2 = vcmp.gt.f32.partialorder %v113_v17, 0.0  ;;  %v119_v19 = vmul.f32 0.01, %v113_v17 }
  0xd6   :  { %v115_v20 = vpop.f32.mrf.mxu0 }
  0xd7   :  { %v120_v21 = vsel %vm118_vm2, %v113_v17, %v119_v19 }
  0xd8   :  { %v2447_v22 = vpop.f32.mrf.mxu0  ;;  %v121_v23 = vpack.c.bf16 %v120_v21, %v120_v21 }
  0xda   :  { %2465 = vmatmul.mubr.bf16.vlgmr.msra.gmra.mxu1 %v121_v23 }
  0xdb   :  { %2508 = vmatprep.mubr.msk.bf16.mxu1 %vm2871_vm0, %v2870_v0  ;;  %2501 = vmatpush3.bf16.msra.mxu1 %v2761_v56 }
  0xdc   :  { %2502 = vmatprep.subr.bf16.mxu1 %v2870_v0 }
  0xdf   :  { %2503 = vmatpush3.bf16.msra.mxu1 %v2762_v57  ;;  %v2785_v57 = vld [vmem:[%s3508_s5 + $0x18] sm:$0xff]  }
  0xe0   :  { %2504 = vmatprep.subr.bf16.mxu1 %v2870_v0 }
  0xe3   :  { %2505 = vmatpush3.bf16.msra.mxu1 %v2763_v58  ;;  %v2786_v58 = vld [vmem:[%s3508_s5 + $0x10] sm:$0xff]  }
  0xe4   :  { %2506 = vmatprep.subr.bf16.mxu1 %v2870_v0 }
  0xe7   :  { %2507 = vmatpush3.bf16.msra.mxu1 %v2764_v59  ;;  %v2787_v59 = vld [vmem:[%s3508_s5 + $0x8] sm:$0xff]  }
  0xe8   :  { %2512 = vmatprep.subr.bf16.mxu1 %v2870_v0 }
 0x19a   :  { %v227_v29 = vpop.f32.mrf.mxu1 }
 0x19b   :  { %v228_v30 = vadd.f32 %v1983_v28, %v227_v29  ;;  %v2776_v28 = vld [vmem:[%s3503_s1 + $0x60] sm:$0xff]  }
 0x19c   :  { %v2466_v31 = vpop.f32.mrf.mxu1  ;;  %v2065_v29 = vld [vmem:[%s3507_s4 + $0x2] ss:$0 sm:$0xff] }
 0x19d   :  { %2846 = vtanh.f32 %v228_v30 }
 0x19e   :  { %v230_v32 = vpop.f32.mrf.mxu1 }
 0x1a0   :  { %v2467_v33 = vpop.f32.mrf.mxu1 }
 0x1aa   :  { %v2847_v34 = vpop.eup %2846 }
 0x1ab   :  { %v234_v35 = vmul.f32 1.442695, %v2847_v34 }
 0x1ad   :  { %2848 = vpow2.f32 %v234_v35 }
 0x1ba   :  { %v2849_v36 = vpop.eup %2848 }
 0x1bb   :  { %v236_v37 = vmul.f32 %v2849_v36, %v2953_v7 }
 0x1bd   :  { %v237_v39 = vpack.c.bf16 %v236_v37, %v236_v37 }
 0x1bf   :  { %2477 = vmatmul.mubr.msk.bf16.vlgmr.msra.gmra.mxu0 %vm74_vm1, %v237_v39  ;;  %v2777_v39 = vld [vmem:[%s3504_s3 + $0xf8] sm:$0xff]  }
 0x1c0   :  { %2481 = vmatpush3.bf16.msra.mxu0 %v2753_v38  ;;  %2496 = vmatprep.mubr.msk.bf16.mxu0 %vm2871_vm0, %v2870_v0 }
 0x1c1   :  { %2482 = vmatprep.subr.bf16.mxu0 %v2870_v0 }
 0x1c4   :  { %2483 = vmatpush3.bf16.msra.mxu0 %v2754_v40 }
 0x1c5   :  { %2484 = vmatprep.subr.bf16.mxu0 %v2870_v0 }
 0x1c8   :  { %2485 = vmatpush3.bf16.msra.mxu0 %v2755_v41  ;;  %v2778_v41 = vld [vmem:[%s3504_s3 + $0xf0] sm:$0xff]  }
 0x1c9   :  { %2486 = vmatprep.subr.bf16.mxu0 %v2870_v0 }
 0x1cc   :  { %2487 = vmatpush3.bf16.msra.mxu0 %v2756_v42  ;;  %v2779_v42 = vld [vmem:[%s3504_s3 + $0xe8] sm:$0xff]  }
 0x1cd   :  { %2488 = vmatprep.subr.bf16.mxu0 %v2870_v0 }
 0x1d0   :  { %2489 = vmatpush3.bf16.msra.mxu0 %v2757_v43  ;;  %v2780_v43 = vld [vmem:[%s3504_s3 + $0xe0] sm:$0xff]  }
 0x1d1   :  { %2490 = vmatprep.subr.bf16.mxu0 %v2870_v0 }
 0x1d4   :  { %2491 = vmatpush3.bf16.msra.mxu0 %v2758_v44  ;;  %v2781_v44 = vld [vmem:[%s3504_s3 + $0xd8] sm:$0xff]  }
 0x1d5   :  { %2492 = vmatprep.subr.bf16.mxu0 %v2870_v0 }
 0x1d8   :  { %2493 = vmatpush3.bf16.msra.mxu0 %v2759_v45  ;;  %v2782_v45 = vld [vmem:[%s3504_s3 + $0xd0] sm:$0xff]  }
 0x1d9   :  { %2494 = vmatprep.subr.bf16.mxu0 %v2870_v0 }
 0x1dc   :  { %2495 = vmatpush3.bf16.msra.mxu0 %v2760_v46  ;;  %v2783_v46 = vld [vmem:[%s3504_s3 + $0xc8] sm:$0xff]  }
 0x1dd   :  { %2532 = vmatprep.subr.bf16.mxu0 %v2870_v0 }
 0x27f   :  { %v316_v48 = vpop.f32.mrf.mxu0 }
 0x280   :  { %v317_v49 = vadd.f32 %v2001_v47, %v316_v48  ;;  %v2784_v47 = vld [vmem:[%s3504_s3 + $0xc0] sm:$0xff]  }
 0x281   :  { %v2478_v50 = vpop.f32.mrf.mxu0  ;;  %v2083_v48 = vld [vmem:[%s3506_s2 + $0x3] ss:$0 sm:$0xff] }
 0x282   :  { %vm322_vm3 = vcmp.gt.f32.partialorder %v317_v49, 0.0  ;;  %v323_v51 = vmul.f32 0.01, %v317_v49 }
 0x283   :  { %v319_v52 = vpop.f32.mrf.mxu0 }
 0x284   :  { %v324_v53 = vsel %vm322_vm3, %v317_v49, %v323_v51 }
 0x285   :  { %v325_v54 = vpack.c.bf16 %v324_v53, %v324_v53  ;;  %v2479_v55 = vpop.f32.mrf.mxu0 }
 0x287   :  { %2497 = vmatmul.mubr.bf16.vlgmr.msra.gmra.mxu0 %v325_v54 }
 0x288   :  { %2540 = vmatprep.mubr.msk.bf16.mxu0 %vm2871_vm0, %v2870_v0  ;;  %2533 = vmatpush3.bf16.msra.mxu0 %v2773_v25  ;;  %v2799_v25 = vld [vmem:[%s3504_s3 + $0x130] sm:$0xff]  }
 0x289   :  { %2534 = vmatprep.subr.bf16.mxu0 %v2870_v0 }
 0x28c   :  { %2535 = vmatpush3.bf16.msra.mxu0 %v2774_v26  ;;  %v2800_v26 = vld [vmem:[%s3504_s3 + $0x128] sm:$0xff]  }
 0x28d   :  { %2536 = vmatprep.subr.bf16.mxu0 %v2870_v0 }
 0x290   :  { %2537 = vmatpush3.bf16.msra.mxu0 %v2775_v27  ;;  %v2801_v27 = vld [vmem:[%s3504_s3 + $0x120] sm:$0xff]  }
 0x291   :  { %2538 = vmatprep.subr.bf16.mxu0 %v2870_v0 }
 0x294   :  { %2539 = vmatpush3.bf16.msra.mxu0 %v2776_v28  ;;  %v2802_v28 = vld [vmem:[%s3504_s3 + $0x118] sm:$0xff]  }
 0x295   :  { %2544 = vmatprep.subr.bf16.mxu0 %v2870_v0 }
 0x347   :  { %v433_v61 = vpop.f32.mrf.mxu0 }
 0x348   :  { %v434_v62 = vadd.f32 %v2024_v60, %v433_v61  ;;  %v2788_v60 = vld [vmem:[%s3508_s5] sm:$0xff]  }
 0x349   :  { %v2498_v63 = vpop.f32.mrf.mxu0  ;;  %v2106_v61 = vld [vmem:[%s3507_s4 + $0x3] ss:$0 sm:$0xff] }
 0x34a   :  { %2850 = vtanh.f32 %v434_v62 }
 0x34b   :  { %v436_v1 = vpop.f32.mrf.mxu0 }
 0x34d   :  { %v2499_v2 = vpop.f32.mrf.mxu0 }
 0x357   :  { %v2851_v3 = vpop.eup %2850 }
 0x358   :  { %v3074_v4 = vadd.f32 %v2851_v3, %v236_v37 }
 0x35a   :  { %v441_v6 = vpack.c.bf16 %v3074_v4, %v3074_v4 }
 0x35c   :  { %2509 = vmatmul.mubr.msk.bf16.vlgmr.msra.gmra.mxu1 %vm74_vm1, %v441_v6 }
 0x35d   :  { %2513 = vmatpush3.bf16.msra.mxu1 %v2765_v5  ;;  %2528 = vmatprep.mubr.msk.bf16.mxu1 %vm2871_vm0, %v2870_v0 }
 0x35e   :  { %2514 = vmatprep.subr.bf16.mxu1 %v2870_v0 }
 0x361   :  { %2515 = vmatpush3.bf16.msra.mxu1 %v2766_v8  ;;  %v2789_v8 = vld [vmem:[%s3509_s8] sm:$0xff]  }
 0x362   :  { %2516 = vmatprep.subr.bf16.mxu1 %v2870_v0 }
 0x365   :  { %2517 = vmatpush3.bf16.msra.mxu1 %v2767_v10 }
 0x366   :  { %2518 = vmatprep.subr.bf16.mxu1 %v2870_v0 }
 0x369   :  { %2519 = vmatpush3.bf16.msra.mxu1 %v2768_v11  ;;  %v2115_v11 = vld [vmem:[%s3511_s6] ss:$0 sm:$0xff] }
 0x36a   :  { %2520 = vmatprep.subr.bf16.mxu1 %v2870_v0 }
 0x36d   :  { %2521 = vmatpush3.bf16.msra.mxu1 %v2769_v12 }
 0x36e   :  { %2522 = vmatprep.subr.bf16.mxu1 %v2870_v0 }
 0x371   :  { %2523 = vmatpush3.bf16.msra.mxu1 %v2770_v13 }
 0x372   :  { %2524 = vmatprep.subr.bf16.mxu1 %v2870_v0 }
 0x375   :  { %2525 = vmatpush3.bf16.msra.mxu1 %v2771_v14  ;;  %v2790_v14 = vld [vmem:[%s3510_s7 + $0x18] sm:$0xff]  }
 0x376   :  { %2526 = vmatprep.subr.bf16.mxu1 %v2870_v0 }
 0x379   :  { %2527 = vmatpush3.bf16.msra.mxu1 %v2772_v15 }
 0x37a   :  { %2564 = vmatprep.subr.bf16.mxu1 %v2870_v0 }
 0x41c   :  { %v520_v17 = vpop.f32.mrf.mxu1 }
 0x41d   :  { %v521_v18 = vadd.f32 %v2042_v16, %v520_v17 }
 0x41e   :  { %v2510_v19 = vpop.f32.mrf.mxu1 }
 0x41f   :  { %vm526_vm4 = vcmp.gt.f32.partialorder %v521_v18, 0.0  ;;  %v527_v20 = vmul.f32 0.01, %v521_v18  ;;  %v2792_v19 = vld [vmem:[%s3510_s7 + $0x8] sm:$0xff]  }
 0x420   :  { %v523_v21 = vpop.f32.mrf.mxu1 }
 0x421   :  { %v528_v22 = vsel %vm526_vm4, %v521_v18, %v527_v20  ;;  %v2791_v18 = vld [vmem:[%s3510_s7 + $0x10] sm:$0xff]   ;;  %v2793_v20 = vld [vmem:[%s3510_s7] sm:$0xff]   ;;  %v2794_v21 = vld [vmem:[%s3503_s1 + $0x98] sm:$0xff]  }
 0x422   :  { %v529_v23 = vpack.c.bf16 %v528_v22, %v528_v22  ;;  %v2511_v24 = vpop.f32.mrf.mxu1  ;;  %v2795_v22 = vld [vmem:[%s3503_s1 + $0x90] sm:$0xff]  }
 0x423   :  { %v2798_v24 = vld [vmem:[%s3504_s3 + $0x138] sm:$0xff]  }
 0x424   :  { %2529 = vmatmul.mubr.bf16.vlgmr.msra.gmra.mxu1 %v529_v23  ;;  %v2796_v23 = vld [vmem:[%s3503_s1 + $0x88] sm:$0xff]  }
 0x425   :  { %2572 = vmatprep.mubr.msk.bf16.mxu1 %vm2871_vm0, %v2870_v0  ;;  %2565 = vmatpush3.bf16.msra.mxu1 %v2785_v57 }
 0x426   :  { %2566 = vmatprep.subr.bf16.mxu1 %v2870_v0 }
 0x429   :  { %2567 = vmatpush3.bf16.msra.mxu1 %v2786_v58 }
 0x42a   :  { %2568 = vmatprep.subr.bf16.mxu1 %v2870_v0 }
 0x42d   :  { %2569 = vmatpush3.bf16.msra.mxu1 %v2787_v59 }
 0x42e   :  { %2570 = vmatprep.subr.bf16.mxu1 %v2870_v0 }
 0x431   :  { %2571 = vmatpush3.bf16.msra.mxu1 %v2788_v60 }
 0x432   :  { %2576 = vmatprep.subr.bf16.mxu1 %v2870_v0 }
 0x4e4   :  { %v637_v30 = vpop.f32.mrf.mxu1 }
 0x4e5   :  { %v638_v31 = vadd.f32 %v2065_v29, %v637_v30  ;;  %v2803_v29 = vld [vmem:[%s3504_s3 + $0x110] sm:$0xff]  }
 0x4e6   :  { %v2530_v32 = vpop.f32.mrf.mxu1 }
 0x4e7   :  { %2852 = vtanh.f32 %v638_v31 }
 0x4e8   :  { %v640_v33 = vpop.f32.mrf.mxu1 }
 0x4ea   :  { %v2531_v34 = vpop.f32.mrf.mxu1 }
 0x4f4   :  { %v2853_v35 = vpop.eup %2852 }
 0x4f5   :  { %v644_v36 = vmul.f32 1.442695, %v2853_v35 }
 0x4f7   :  { %2854 = vpow2.f32 %v644_v36 }
 0x504   :  { %v2855_v37 = vpop.eup %2854 }
 0x505   :  { %v646_v38 = vmul.f32 %v2855_v37, %v3074_v4 }
 0x507   :  { %v647_v40 = vpack.c.bf16 %v646_v38, %v646_v38 }
 0x509   :  { %2541 = vmatmul.mubr.msk.bf16.vlgmr.msra.gmra.mxu0 %vm74_vm1, %v647_v40  ;;  %v2804_v40 = vld [vmem:[%s3504_s3 + $0x108] sm:$0xff]  }
 0x50a   :  { %2545 = vmatpush3.bf16.msra.mxu0 %v2777_v39  ;;  %2560 = vmatprep.mubr.msk.bf16.mxu0 %vm2871_vm0, %v2870_v0 }
 0x50b   :  { %2546 = vmatprep.subr.bf16.mxu0 %v2870_v0 }
 0x50e   :  { %2547 = vmatpush3.bf16.msra.mxu0 %v2778_v41  ;;  %v2805_v41 = vld [vmem:[%s3504_s3 + $0x100] sm:$0xff]  }
 0x50f   :  { %2548 = vmatprep.subr.bf16.mxu0 %v2870_v0 }
 0x512   :  { %2549 = vmatpush3.bf16.msra.mxu0 %v2779_v42  ;;  %v2137_v42 = vld [vmem:[%s3506_s2 + $0x4] ss:$0 sm:$0xff] }
 0x513   :  { %2550 = vmatprep.subr.bf16.mxu0 %v2870_v0 }
 0x516   :  { %2551 = vmatpush3.bf16.msra.mxu0 %v2780_v43 }
 0x517   :  { %2552 = vmatprep.subr.bf16.mxu0 %v2870_v0 }
 0x51a   :  { %2553 = vmatpush3.bf16.msra.mxu0 %v2781_v44 }
 0x51b   :  { %2554 = vmatprep.subr.bf16.mxu0 %v2870_v0 }
 0x51e   :  { %2555 = vmatpush3.bf16.msra.mxu0 %v2782_v45 }
 0x51f   :  { %2556 = vmatprep.subr.bf16.mxu0 %v2870_v0 }
 0x522   :  { %2557 = vmatpush3.bf16.msra.mxu0 %v2783_v46 }
 0x523   :  { %2558 = vmatprep.subr.bf16.mxu0 %v2870_v0 }
 0x526   :  { %2559 = vmatpush3.bf16.msra.mxu0 %v2784_v47 }
 0x527   :  { %2594 = vmatprep.subr.bf16.mxu0 %v2870_v0 }
 0x5c9   :  { %v726_v49 = vpop.f32.mrf.mxu0 }
 0x5ca   :  { %v727_v50 = vadd.f32 %v2083_v48, %v726_v49 }
 0x5cb   :  { %v2542_v51 = vpop.f32.mrf.mxu0 }
 0x5cc   :  { %vm732_vm5 = vcmp.gt.f32.partialorder %v727_v50, 0.0  ;;  %v733_v52 = vmul.f32 0.01, %v727_v50  ;;  %v2806_v51 = vld [vmem:[%s3503_s1 + $0xb8] sm:$0xff]  }
 0x5cd   :  { %v729_v53 = vpop.f32.mrf.mxu0 }
 0x5ce   :  { %v734_v54 = vsel %vm732_vm5, %v727_v50, %v733_v52  ;;  %v2807_v52 = vld [vmem:[%s3503_s1 + $0xb0] sm:$0xff]   ;;  %v2808_v53 = vld [vmem:[%s3503_s1 + $0xa8] sm:$0xff]  }
 0x5cf   :  { %v735_v55 = vpack.c.bf16 %v734_v54, %v734_v54  ;;  %v2543_v56 = vpop.f32.mrf.mxu0  ;;  %v2809_v54 = vld [vmem:[%s3503_s1 + $0xa0] sm:$0xff]  }
 0x5d1   :  { %2561 = vmatmul.mubr.bf16.vlgmr.msra.gmra.mxu0 %v735_v55  ;;  %v2160_v55 = vld [vmem:[%s3507_s4 + $0x4] ss:$0 sm:$0xff] }
 0x5d2   :  { %2602 = vmatprep.mubr.msk.bf16.mxu0 %vm2871_vm0, %v2870_v0  ;;  %2595 = vmatpush3.bf16.msra.mxu0 %v2794_v21 }
 0x5d3   :  { %2596 = vmatprep.subr.bf16.mxu0 %v2870_v0 }
 0x5d6   :  { %2597 = vmatpush3.bf16.msra.mxu0 %v2795_v22  ;;  %v2818_v22 = vld [vmem:[%s3503_s1 + $0xd8] sm:$0xff]  }
 0x5d7   :  { %2598 = vmatprep.subr.bf16.mxu0 %v2870_v0 }
 0x5da   :  { %2599 = vmatpush3.bf16.msra.mxu0 %v2796_v23  ;;  %v2819_v23 = vld [vmem:[%s3503_s1 + $0xd0] sm:$0xff]  }
 0x5db   :  { %2600 = vmatprep.subr.bf16.mxu0 %v2870_v0 }
 0x691   :  { %v843_v62 = vpop.f32.mrf.mxu0 }
 0x692   :  { %v844_v63 = vadd.f32 %v2106_v61, %v843_v62 }
 0x693   :  { %v2562_v1 = vpop.f32.mrf.mxu0 }
 0x694   :  { %2856 = vtanh.f32 %v844_v63 }
 0x695   :  { %v846_v2 = vpop.f32.mrf.mxu0 }
 0x696   :  { %v2810_v2 = vld [vmem:[%s3504_s3 + $0x178] sm:$0xff]  }
 0x697   :  { %v2563_v3 = vpop.f32.mrf.mxu0 }
 0x6a1   :  { %v2857_v4 = vpop.eup %2856 }
 0x6a2   :  { %v850_v5 = vadd.f32 %v2857_v4, %v646_v38  ;;  %v2811_v4 = vld [vmem:[%s3504_s3 + $0x170] sm:$0xff]  }
 0x6a4   :  { %v851_v6 = vadd.f32 %v850_v5, %v2953_v7  ;;  %v2812_v5 = vld [vmem:[%s3504_s3 + $0x168] sm:$0xff]  }
 0x6a6   :  { %v852_v10 = vpack.c.bf16 %v851_v6, %v851_v6  ;;  %v2813_v6 = vld [vmem:[%s3504_s3 + $0x160] sm:$0xff]  }
 0x6a8   :  { %2573 = vmatmul.mubr.msk.bf16.vlgmr.msra.gmra.mxu1 %vm74_vm1, %v852_v10  ;;  %v2815_v10 = vld [vmem:[%s3504_s3 + $0x150] sm:$0xff]  }
 0x6a9   :  { %2577 = vmatpush3.bf16.msra.mxu1 %v2789_v8  ;;  %2578 = vmatprep.mubr.msk.bf16.mxu1 %vm2871_vm0, %v2870_v0  ;;  %v2814_v8 = vld [vmem:[%s3504_s3 + $0x158] sm:$0xff]  }
 0x6aa   :  { %2582 = vmatprep.subr.bf16.mxu1 %v2870_v0 }
 0x768   :  { %v929_v12 = vpop.f32.mrf.mxu1 }
 0x769   :  { %v3208_v13 = vadd.f32 %v2115_v11, %v929_v12  ;;  %v2816_v11 = vld [vmem:[%s3504_s3 + $0x148] sm:$0xff]   ;;  %v2817_v12 = vld [vmem:[%s3504_s3 + $0x140] sm:$0xff]  }
 0x76a   :  { %v2574_v7 = vpop.f32.mrf.mxu1 }
 0x76b   :  { %v943_v15 = vpack.c.bf16 %v3208_v13, %v3208_v13  ;;  %v2178_v7 = vld [vmem:[%s3506_s2 + $0x5] ss:$0 sm:$0xff] }
 0x76c   :  { %v932_v16 = vpop.f32.mrf.mxu1 }
 0x76d   :  { %2579 = vmatmul.mubr.msk.bf16.vlgmr.msra.gmra.mxu1 %vm952_vm6, %v943_v15 }
 0x76e   :  { %2583 = vmatpush3.bf16.msra.mxu1 %v2790_v14  ;;  %v2575_v17 = vpop.f32.mrf.mxu1  ;;  %2590 = vmatprep.mubr.msk.bf16.mxu1 %vm2871_vm0, %v2870_v0 }
 0x76f   :  { %2584 = vmatprep.subr.bf16.mxu1 %v2870_v0 }
 0x772   :  { %2585 = vmatpush3.bf16.msra.mxu1 %v2791_v18 }
 0x773   :  { %2586 = vmatprep.subr.bf16.mxu1 %v2870_v0 }
 0x776   :  { %2587 = vmatpush3.bf16.msra.mxu1 %v2792_v19 }
 0x777   :  { %2588 = vmatprep.subr.bf16.mxu1 %v2870_v0 }
 0x77a   :  { %2589 = vmatpush3.bf16.msra.mxu1 %v2793_v20 }
 0x77b   :  { %2606 = vmatprep.subr.bf16.mxu1 %v2870_v0 }
 0x77d   :  { %2591 = vmatmul.mubr.msk.bf16.vlgmr.msra.gmra.mxu1 %vm74_vm1, %v2962_v9  ;;  %v2797_v9 = vld [vmem:[%s3503_s1 + $0x80] sm:$0xff]  }
 0x77e   :  { %2622 = vmatprep.mubr.msk.bf16.mxu1 %vm2871_vm0, %v2870_v0  ;;  %2601 = vmatpush3.bf16.msra.mxu0 %v2797_v9  ;;  %v2820_v9 = vld [vmem:[%s3503_s1 + $0xc8] sm:$0xff]  }
 0x77f   :  { %2626 = vmatprep.subr.bf16.mxu0 %v2870_v0  ;;  %2607 = vmatpush3.bf16.msra.mxu1 %v2798_v24  ;;  %v2821_v24 = vld [vmem:[%s3503_s1 + $0xc0] sm:$0xff]  }
 0x780   :  { %2608 = vmatprep.subr.bf16.mxu1 %v2870_v0 }
 0x783   :  { %2609 = vmatpush3.bf16.msra.mxu1 %v2799_v25  ;;  %v2201_v25 = vld [vmem:[%s3507_s4 + $0x5] ss:$0 sm:$0xff] }
 0x784   :  { %2610 = vmatprep.subr.bf16.mxu1 %v2870_v0 }
 0x787   :  { %2611 = vmatpush3.bf16.msra.mxu1 %v2800_v26 }
 0x788   :  { %2612 = vmatprep.subr.bf16.mxu1 %v2870_v0 }
 0x78b   :  { %2613 = vmatpush3.bf16.msra.mxu1 %v2801_v27 }
 0x78c   :  { %2614 = vmatprep.subr.bf16.mxu1 %v2870_v0 }
 0x78f   :  { %2615 = vmatpush3.bf16.msra.mxu1 %v2802_v28 }
 0x790   :  { %2616 = vmatprep.subr.bf16.mxu1 %v2870_v0 }
 0x793   :  { %2617 = vmatpush3.bf16.msra.mxu1 %v2803_v29 }
 0x794   :  { %2618 = vmatprep.subr.bf16.mxu1 %v2870_v0 }
 0x797   :  { %2619 = vmatpush3.bf16.msra.mxu1 %v2804_v40  ;;  %v2827_v40 = vld [vmem:[%s3504_s3 + $0x190] sm:$0xff]  }
 0x798   :  { %2620 = vmatprep.subr.bf16.mxu1 %v2870_v0 }
 0x79b   :  { %2621 = vmatpush3.bf16.msra.mxu1 %v2805_v41  ;;  %v2828_v41 = vld [vmem:[%s3504_s3 + $0x188] sm:$0xff]  }
 0x79c   :  { %2658 = vmatprep.subr.bf16.mxu1 %v2870_v0 }
 0x82d   :  { %v990_v30 = vpop.f32.mrf.mxu1 }
 0x82f   :  { %v2580_v31 = vpop.f32.mrf.mxu1 }
 0x831   :  { %v993_v32 = vpop.f32.mrf.mxu1 }
 0x833   :  { %v2581_v33 = vpop.f32.mrf.mxu1 }
 0x834   :  { %v2822_v33 = vld [vmem:[%s3504_s3 + $0x1b8] sm:$0xff]  }
 0x83d   :  { %v1054_v34 = vpop.f32.mrf.mxu1 }
 0x83e   :  { %v3275_v35 = vadd.f32 %v1054_v34, %v990_v30 }
 0x83f   :  { %v2592_v36 = vpop.f32.mrf.mxu1 }
 0x840   :  { %v1060_v37 = vpack.c.bf16 %v3275_v35, %v3275_v35  ;;  %v2823_v36 = vld [vmem:[%s3504_s3 + $0x1b0] sm:$0xff]  }
 0x841   :  { %v1057_v38 = vpop.f32.mrf.mxu1 }
 0x842   :  { %2603 = vmatmul.mubr.msk.bf16.vlgmr.msra.gmra.mxu0 %vm74_vm1, %v1060_v37  ;;  %v2824_v37 = vld [vmem:[%s3504_s3 + $0x1a8] sm:$0xff]   ;;  %v2825_v38 = vld [vmem:[%s3504_s3 + $0x1a0] sm:$0xff]  }
 0x843   :  { %v2593_v39 = vpop.f32.mrf.mxu1  ;;  %2634 = vmatprep.mubr.msk.bf16.mxu0 %vm2871_vm0, %v2870_v0  ;;  %2627 = vmatpush3.bf16.msra.mxu0 %v2806_v51 }
 0x844   :  { %2628 = vmatprep.subr.bf16.mxu0 %v2870_v0  ;;  %v2826_v39 = vld [vmem:[%s3504_s3 + $0x198] sm:$0xff]  }
 0x847   :  { %2629 = vmatpush3.bf16.msra.mxu0 %v2807_v52  ;;  %v2830_v52 = vld [vmem:[%s3503_s1 + $0xf8] sm:$0xff]  }
 0x848   :  { %2630 = vmatprep.subr.bf16.mxu0 %v2870_v0 }
 0x84b   :  { %2631 = vmatpush3.bf16.msra.mxu0 %v2808_v53  ;;  %v2831_v53 = vld [vmem:[%s3503_s1 + $0xf0] sm:$0xff]  }
 0x84c   :  { %2632 = vmatprep.subr.bf16.mxu0 %v2870_v0 }
 0x84f   :  { %2633 = vmatpush3.bf16.msra.mxu0 %v2809_v54  ;;  %v2832_v54 = vld [vmem:[%s3503_s1 + $0xe8] sm:$0xff]  }
 0x850   :  { %2638 = vmatprep.subr.bf16.mxu0 %v2870_v0 }
 0x902   :  { %v1139_v43 = vpop.f32.mrf.mxu0 }
 0x903   :  { %v1140_v44 = vadd.f32 %v2137_v42, %v1139_v43  ;;  %v2829_v42 = vld [vmem:[%s3504_s3 + $0x180] sm:$0xff]  }
 0x904   :  { %v2604_v45 = vpop.f32.mrf.mxu0  ;;  %v2219_v43 = vld [vmem:[%s3506_s2 + $0x6] ss:$0 sm:$0xff] }
 0x905   :  { %vm1145_vm7 = vcmp.gt.f32.partialorder %v1140_v44, 0.0  ;;  %v1146_v46 = vmul.f32 0.01, %v1140_v44 }
 0x906   :  { %v1142_v47 = vpop.f32.mrf.mxu0 }
 0x907   :  { %v1147_v48 = vsel %vm1145_vm7, %v1140_v44, %v1146_v46 }
 0x908   :  { %v1148_v49 = vpack.c.bf16 %v1147_v48, %v1147_v48  ;;  %v2605_v50 = vpop.f32.mrf.mxu0 }
 0x90a   :  { %2623 = vmatmul.mubr.bf16.vlgmr.msra.gmra.mxu1 %v1148_v49 }
 0x90b   :  { %2666 = vmatprep.mubr.msk.bf16.mxu1 %vm2871_vm0, %v2870_v0  ;;  %2659 = vmatpush3.bf16.msra.mxu1 %v2818_v22 }
 0x90c   :  { %2660 = vmatprep.subr.bf16.mxu1 %v2870_v0 }
 0x90f   :  { %2661 = vmatpush3.bf16.msra.mxu1 %v2819_v23  ;;  %v2842_v23 = vld [vmem:[%s3508_s5 + $0x38] sm:$0xff]  }
 0x910   :  { %2662 = vmatprep.subr.bf16.mxu1 %v2870_v0 }
 0x913   :  { %2663 = vmatpush3.bf16.msra.mxu1 %v2820_v9  ;;  %v2843_v9 = vld [vmem:[%s3508_s5 + $0x30] sm:$0xff]  }
 0x914   :  { %2664 = vmatprep.subr.bf16.mxu1 %v2870_v0 }
 0x917   :  { %2665 = vmatpush3.bf16.msra.mxu1 %v2821_v24  ;;  %v2844_v24 = vld [vmem:[%s3508_s5 + $0x28] sm:$0xff]  }
 0x918   :  { %2670 = vmatprep.subr.bf16.mxu1 %v2870_v0 }
 0x9ca   :  { %v1256_v56 = vpop.f32.mrf.mxu1 }
 0x9cb   :  { %v1257_v57 = vadd.f32 %v2160_v55, %v1256_v56  ;;  %v2833_v55 = vld [vmem:[%s3503_s1 + $0xe0] sm:$0xff]  }
 0x9cc   :  { %v2624_v58 = vpop.f32.mrf.mxu1  ;;  %v2242_v56 = vld [vmem:[%s3507_s4 + $0x6] ss:$0 sm:$0xff] }
 0x9cd   :  { %2858 = vtanh.f32 %v1257_v57 }
 0x9ce   :  { %v1259_v59 = vpop.f32.mrf.mxu1 }
 0x9d0   :  { %v2625_v60 = vpop.f32.mrf.mxu1 }
 0x9da   :  { %v2859_v61 = vpop.eup %2858 }
 0x9db   :  { %v1263_v62 = vmul.f32 1.442695, %v2859_v61 }
 0x9dd   :  { %2860 = vpow2.f32 %v1263_v62 }
 0x9ea   :  { %v2861_v63 = vpop.eup %2860 }
 0x9eb   :  { %v1265_v1 = vmul.f32 %v2861_v63, %v3275_v35 }
 0x9ed   :  { %v1266_v3 = vpack.c.bf16 %v1265_v1, %v1265_v1 }
 0x9ef   :  { %2635 = vmatmul.mubr.msk.bf16.vlgmr.msra.gmra.mxu0 %vm74_vm1, %v1266_v3  ;;  %v2834_v3 = vld [vmem:[%s3504_s3 + $0x1f8] sm:$0xff]  }
 0x9f0   :  { %2639 = vmatpush3.bf16.msra.mxu0 %v2810_v2  ;;  %2654 = vmatprep.mubr.msk.bf16.mxu0 %vm2871_vm0, %v2870_v0 }
 0x9f1   :  { %2640 = vmatprep.subr.bf16.mxu0 %v2870_v0 }
 0x9f4   :  { %2641 = vmatpush3.bf16.msra.mxu0 %v2811_v4 }
 0x9f5   :  { %2642 = vmatprep.subr.bf16.mxu0 %v2870_v0 }
 0x9f8   :  { %2643 = vmatpush3.bf16.msra.mxu0 %v2812_v5  ;;  %v2835_v5 = vld [vmem:[%s3504_s3 + $0x1f0] sm:$0xff]  }
 0x9f9   :  { %2644 = vmatprep.subr.bf16.mxu0 %v2870_v0 }
 0x9fc   :  { %2645 = vmatpush3.bf16.msra.mxu0 %v2813_v6  ;;  %v2836_v6 = vld [vmem:[%s3504_s3 + $0x1e8] sm:$0xff]  }
 0x9fd   :  { %2646 = vmatprep.subr.bf16.mxu0 %v2870_v0 }
 0xa00   :  { %2647 = vmatpush3.bf16.msra.mxu0 %v2814_v8  ;;  %v2837_v8 = vld [vmem:[%s3504_s3 + $0x1e0] sm:$0xff]  }
 0xa01   :  { %2648 = vmatprep.subr.bf16.mxu0 %v2870_v0 }
 0xa04   :  { %2649 = vmatpush3.bf16.msra.mxu0 %v2815_v10  ;;  %v2838_v10 = vld [vmem:[%s3504_s3 + $0x1d8] sm:$0xff]  }
 0xa05   :  { %2650 = vmatprep.subr.bf16.mxu0 %v2870_v0 }
 0xa08   :  { %2651 = vmatpush3.bf16.msra.mxu0 %v2816_v11  ;;  %v2839_v11 = vld [vmem:[%s3504_s3 + $0x1d0] sm:$0xff]  }
 0xa09   :  { %2652 = vmatprep.subr.bf16.mxu0 %v2870_v0 }
 0xa0c   :  { %2653 = vmatpush3.bf16.msra.mxu0 %v2817_v12  ;;  %v2840_v12 = vld [vmem:[%s3504_s3 + $0x1c8] sm:$0xff]  }
 0xa0d   :  { %2690 = vmatprep.subr.bf16.mxu0 %v2870_v0 }
 0xaaf   :  { %v1345_v14 = vpop.f32.mrf.mxu0 }
 0xab0   :  { %v1346_v15 = vadd.f32 %v2178_v7, %v1345_v14  ;;  %v2841_v7 = vld [vmem:[%s3504_s3 + $0x1c0] sm:$0xff]  }
 0xab1   :  { %v2636_v16 = vpop.f32.mrf.mxu0  ;;  %v2260_v14 = vld [vmem:[%s3506_s2 + $0x7] ss:$0 sm:$0xff] }
 0xab2   :  { %vm1351_vm8 = vcmp.gt.f32.partialorder %v1346_v15, 0.0  ;;  %v1352_v17 = vmul.f32 0.01, %v1346_v15 }
 0xab3   :  { %v1348_v18 = vpop.f32.mrf.mxu0 }
 0xab4   :  { %v1353_v19 = vsel %vm1351_vm8, %v1346_v15, %v1352_v17 }
 0xab5   :  { %v1354_v20 = vpack.c.bf16 %v1353_v19, %v1353_v19  ;;  %v2637_v21 = vpop.f32.mrf.mxu0 }
 0xab7   :  { %2655 = vmatmul.mubr.bf16.vlgmr.msra.gmra.mxu0 %v1354_v20 }
 0xab8   :  { %2698 = vmatprep.mubr.msk.bf16.mxu0 %vm2871_vm0, %v2870_v0  ;;  %2691 = vmatpush3.bf16.msra.mxu0 %v2830_v52 }
 0xab9   :  { %2692 = vmatprep.subr.bf16.mxu0 %v2870_v0 }
 0xabc   :  { %2693 = vmatpush3.bf16.msra.mxu0 %v2831_v53 }
 0xabd   :  { %2694 = vmatprep.subr.bf16.mxu0 %v2870_v0 }
 0xac0   :  { %2695 = vmatpush3.bf16.msra.mxu0 %v2832_v54 }
 0xac1   :  { %2696 = vmatprep.subr.bf16.mxu0 %v2870_v0 }
 0xac4   :  { %2697 = vmatpush3.bf16.msra.mxu0 %v2833_v55 }
 0xac5   :  { %2702 = vmatprep.subr.bf16.mxu0 %v2870_v0 }
 0xb77   :  { %v1462_v26 = vpop.f32.mrf.mxu0 }
 0xb78   :  { %v1463_v27 = vadd.f32 %v2201_v25, %v1462_v26  ;;  %v2845_v25 = vld [vmem:[%s3508_s5 + $0x20] sm:$0xff]  }
 0xb79   :  { %v2656_v28 = vpop.f32.mrf.mxu0  ;;  %v2283_v26 = vld [vmem:[%s3507_s4 + $0x7] ss:$0 sm:$0xff]  ;;  %s2872_s4 = smov 16  }
 0xb7a   :  { %2862 = vtanh.f32 %v1463_v27 }
 0xb7b   :  { %v1465_v29 = vpop.f32.mrf.mxu0 }
 0xb7d   :  { %v2657_v30 = vpop.f32.mrf.mxu0 }
 0xb87   :  { %v2863_v31 = vpop.eup %2862 }
 0xb88   :  { %v3374_v32 = vadd.f32 %v2863_v31, %v1265_v1 }
 0xb8a   :  { %v1470_v34 = vpack.c.bf16 %v3374_v32, %v3374_v32 }
 0xb8c   :  { %2667 = vmatmul.mubr.msk.bf16.vlgmr.msra.gmra.mxu1 %vm74_vm1, %v1470_v34 }
 0xb8d   :  { %2671 = vmatpush3.bf16.msra.mxu1 %v2822_v33  ;;  %2686 = vmatprep.mubr.msk.bf16.mxu1 %vm2871_vm0, %v2870_v0 }
 0xb8e   :  { %2672 = vmatprep.subr.bf16.mxu1 %v2870_v0 }
 0xb91   :  { %2673 = vmatpush3.bf16.msra.mxu1 %v2823_v36 }
 0xb92   :  { %2674 = vmatprep.subr.bf16.mxu1 %v2870_v0 }
 0xb95   :  { %2675 = vmatpush3.bf16.msra.mxu1 %v2824_v37 }
 0xb96   :  { %2676 = vmatprep.subr.bf16.mxu1 %v2870_v0 }
 0xb99   :  { %2677 = vmatpush3.bf16.msra.mxu1 %v2825_v38 }
 0xb9a   :  { %2678 = vmatprep.subr.bf16.mxu1 %v2870_v0 }
 0xb9d   :  { %2679 = vmatpush3.bf16.msra.mxu1 %v2826_v39 }
 0xb9e   :  { %2680 = vmatprep.subr.bf16.mxu1 %v2870_v0 }
 0xba1   :  { %2681 = vmatpush3.bf16.msra.mxu1 %v2827_v40 }
 0xba2   :  { %2682 = vmatprep.subr.bf16.mxu1 %v2870_v0 }
 0xba5   :  { %2683 = vmatpush3.bf16.msra.mxu1 %v2828_v41 }
 0xba6   :  { %2684 = vmatprep.subr.bf16.mxu1 %v2870_v0 }
 0xba9   :  { %2685 = vmatpush3.bf16.msra.mxu1 %v2829_v42 }
 0xbaa   :  { %2722 = vmatprep.subr.bf16.mxu1 %v2870_v0 }
 0xc4c   :  { %v1549_v44 = vpop.f32.mrf.mxu1 }
 0xc4d   :  { %v1550_v45 = vadd.f32 %v2219_v43, %v1549_v44 }
 0xc4e   :  { %v2668_v46 = vpop.f32.mrf.mxu1 }
 0xc4f   :  { %vm1555_vm9 = vcmp.gt.f32.partialorder %v1550_v45, 0.0  ;;  %v1556_v47 = vmul.f32 0.01, %v1550_v45 }
 0xc50   :  { %v1552_v48 = vpop.f32.mrf.mxu1 }
 0xc51   :  { %v1557_v49 = vsel %vm1555_vm9, %v1550_v45, %v1556_v47 }
 0xc52   :  { %v1558_v50 = vpack.c.bf16 %v1557_v49, %v1557_v49  ;;  %v2669_v51 = vpop.f32.mrf.mxu1 }
 0xc54   :  { %2687 = vmatmul.mubr.bf16.vlgmr.msra.gmra.mxu1 %v1558_v50 }
 0xc55   :  { %2730 = vmatprep.mubr.msk.bf16.mxu1 %vm2871_vm0, %v2870_v0  ;;  %2723 = vmatpush3.bf16.msra.mxu1 %v2842_v23 }
 0xc56   :  { %2724 = vmatprep.subr.bf16.mxu1 %v2870_v0 }
 0xc59   :  { %2725 = vmatpush3.bf16.msra.mxu1 %v2843_v9 }
 0xc5a   :  { %2726 = vmatprep.subr.bf16.mxu1 %v2870_v0 }
 0xc5d   :  { %2727 = vmatpush3.bf16.msra.mxu1 %v2844_v24 }
 0xc5e   :  { %2728 = vmatprep.subr.bf16.mxu1 %v2870_v0 }
 0xc61   :  { %2729 = vmatpush3.bf16.msra.mxu1 %v2845_v25 }
 0xd14   :  { %v1666_v57 = vpop.f32.mrf.mxu1 }
 0xd15   :  { %v1667_v58 = vadd.f32 %v2242_v56, %v1666_v57 }
 0xd16   :  { %v2688_v59 = vpop.f32.mrf.mxu1 }
 0xd17   :  { %2864 = vtanh.f32 %v1667_v58 }
 0xd18   :  { %v1669_v60 = vpop.f32.mrf.mxu1 }
 0xd1a   :  { %v2689_v61 = vpop.f32.mrf.mxu1 }
 0xd24   :  { %v2865_v62 = vpop.eup %2864 }
 0xd25   :  { %v1673_v63 = vmul.f32 1.442695, %v2865_v62 }
 0xd27   :  { %2866 = vpow2.f32 %v1673_v63 }
 0xd34   :  { %v2867_v1 = vpop.eup %2866 }
 0xd35   :  { %v1675_v2 = vmul.f32 %v2867_v1, %v3374_v32 }
 0xd37   :  { %v1676_v4 = vpack.c.bf16 %v1675_v2, %v1675_v2 }
 0xd39   :  { %2699 = vmatmul.mubr.msk.bf16.vlgmr.msra.gmra.mxu0 %vm74_vm1, %v1676_v4 }
 0xd3a   :  { %2703 = vmatpush3.bf16.msra.mxu0 %v2834_v3  ;;  %2718 = vmatprep.mubr.msk.bf16.mxu0 %vm2871_vm0, %v2870_v0 }
 0xd3b   :  { %2704 = vmatprep.subr.bf16.mxu0 %v2870_v0 }
 0xd3e   :  { %2705 = vmatpush3.bf16.msra.mxu0 %v2835_v5 }
 0xd3f   :  { %2706 = vmatprep.subr.bf16.mxu0 %v2870_v0 }
 0xd42   :  { %2707 = vmatpush3.bf16.msra.mxu0 %v2836_v6 }
 0xd43   :  { %2708 = vmatprep.subr.bf16.mxu0 %v2870_v0 }
 0xd46   :  { %2709 = vmatpush3.bf16.msra.mxu0 %v2837_v8 }
 0xd47   :  { %2710 = vmatprep.subr.bf16.mxu0 %v2870_v0 }
 0xd4a   :  { %2711 = vmatpush3.bf16.msra.mxu0 %v2838_v10 }
 0xd4b   :  { %2712 = vmatprep.subr.bf16.mxu0 %v2870_v0 }
 0xd4e   :  { %2713 = vmatpush3.bf16.msra.mxu0 %v2839_v11 }
 0xd4f   :  { %2714 = vmatprep.subr.bf16.mxu0 %v2870_v0 }
 0xd52   :  { %2715 = vmatpush3.bf16.msra.mxu0 %v2840_v12 }
 0xd53   :  { %2716 = vmatprep.subr.bf16.mxu0 %v2870_v0  ;;  %v2301_v0 = vld [vmem:[%s3511_s6 + $0x1] ss:$0 sm:$0xff] }
 0xd56   :  { %2717 = vmatpush3.bf16.msra.mxu0 %v2841_v7 }
 0xdf9   :  { %v1755_v15 = vpop.f32.mrf.mxu0 }
 0xdfa   :  { %v1756_v16 = vadd.f32 %v2260_v14, %v1755_v15 }
 0xdfb   :  { %v2700_v17 = vpop.f32.mrf.mxu0 }
 0xdfc   :  { %vm1761_vm10 = vcmp.gt.f32.partialorder %v1756_v16, 0.0  ;;  %v1762_v18 = vmul.f32 0.01, %v1756_v16 }
 0xdfd   :  { %v1758_v19 = vpop.f32.mrf.mxu0 }
 0xdfe   :  { %v1763_v20 = vsel %vm1761_vm10, %v1756_v16, %v1762_v18 }
 0xdff   :  { %v1764_v21 = vpack.c.bf16 %v1763_v20, %v1763_v20  ;;  %v2701_v22 = vpop.f32.mrf.mxu0 }
 0xe01   :  { %2719 = vmatmul.mubr.bf16.vlgmr.msra.gmra.mxu0 %v1764_v21 }
 0xec1   :  { %v1872_v27 = vpop.f32.mrf.mxu0 }
 0xec2   :  { %v1873_v28 = vadd.f32 %v2283_v26, %v1872_v27 }
 0xec3   :  { %v2720_v29 = vpop.f32.mrf.mxu0 }
 0xec4   :  { %2868 = vtanh.f32 %v1873_v28 }
 0xec5   :  { %v1875_v30 = vpop.f32.mrf.mxu0 }
 0xec7   :  { %v2721_v31 = vpop.f32.mrf.mxu0 }
 0xed1   :  { %v2869_v32 = vpop.eup %2868 }
 0xed2   :  { %v1879_v33 = vadd.f32 %v2869_v32, %v1675_v2 }
 0xed4   :  { %v1880_v34 = vadd.f32 %v1879_v33, %v3275_v35 }
 0xed6   :  { %v1881_v36 = vpack.c.bf16 %v1880_v34, %v1880_v34 }
 0xed8   :  { %2731 = vmatmul.mubr.msk.bf16.vlgmr.msra.gmra.mxu1 %vm74_vm1, %v1881_v36 }
 0xf98   :  { %v1960_v37 = vpop.f32.mrf.mxu1 }
 0xf99   :  { %v1961_v38 = vadd.f32 %v2301_v0, %v1960_v37 }
 0xf9a   :  { %v2732_v39 = vpop.f32.mrf.mxu1 }
 0xf9b   :  { %1967 = vrot.lane.b32.xlu0 %v1961_v38, %s2872_s4 }
 0xf9c   :  { %v1963_v40 = vpop.f32.mrf.mxu1 }
 0xf9e   :  { %v2733_v41 = vpop.f32.mrf.mxu1 }
0x100d   :  { %v1968_v42 = vpop.permute.xlu0 %1967 }
0x100e   :  { %v1970_v43 = vsel %vm952_vm6, %v3208_v13, %v1968_v42 }
0x100f   :  { %1972 = vst.msk [vmem:[%s3512_s9] sm:$0x3] %vm1971_vm11, %v1970_v43 }

</bundles_post_ra>
